<compile_context>
chip_gen: v7x
topology: tpu7x:2x2x1
jax: 0.10.0
libtpu: 0.0.40
codegen_flags: <defaults>
</compile_context>

<pallas_src>
import functools
import math

import numpy as np
import jax
import jax.numpy as jnp
from jax import lax
from jax import image as jax_image
from jax.experimental import pallas as pl
from jax.experimental.pallas import tpu as pltpu

NUM_CLASSES = 21  # cfg.TRAIN.CLASSES_NUM = 20  ->  +1 (background)

# Convs whose GEMM would have >= this many output rows (batch * H * W) are routed through
# XLA's implicit-im2col conv instead of materializing kh*kw-times-blown-up patches.
XLA_CONV_MIN_ROWS = 16384

# Candidate K tile sizes (all multiples of 128 so the A-block lane dim is legal).
_TK_CANDIDATES = (4608, 3072, 2560, 2304, 2048, 1792, 1536, 1280, 1152, 1024,
                  896, 768, 640, 512, 384, 256, 128)
_TK_FULL_MAX = 4608          # K <= this -> single full-K block (no reduction grid axis)
_VMEM_LIMIT = 32 * 1024 * 1024


# ----------------------------------------------------------------------------
# Pallas kernels: tiled GEMM with fused per-output-channel scale/shift (+ ReLU)
# ----------------------------------------------------------------------------
def _gemm_kernel_single(a_ref, b_ref, scale_ref, shift_ref, o_ref, *, relu):
    """K fits in one block: compute, apply epilogue, store."""
    acc = jnp.dot(a_ref[...], b_ref[...], preferred_element_type=jnp.float32)
    y = acc * scale_ref[...] + shift_ref[...]
    if relu:
        y = jnp.maximum(y, 0.0)
    o_ref[...] = y.astype(o_ref.dtype)


def _gemm_kernel_multi(a_ref, b_ref, scale_ref, shift_ref, o_ref, acc_ref, *, relu):
    """K is tiled: accumulate in VMEM scratch, epilogue on the last K step."""
    @pl.when(pl.program_id(2) == 0)
    def _():
        acc_ref[...] = jnp.zeros_like(acc_ref)

    acc_ref[...] += jnp.dot(a_ref[...], b_ref[...],
                            preferred_element_type=jnp.float32)

    @pl.when(pl.program_id(2) == pl.num_programs(2) - 1)
    def _():
        y = acc_ref[...] * scale_ref[...] + shift_ref[...]
        if relu:
            y = jnp.maximum(y, 0.0)
        o_ref[...] = y.astype(o_ref.dtype)


def _ceil_to(x, m):
    return ((x + m - 1) // m) * m


def _choose_tiles(M, K, N):
    """Pick (TM, TN, TK, pad_k) so that no activation/weight padding copy is needed."""
    # M: full block for small layers (full-dim blocks are always legal), else 256 + cdiv grid
    # (out-of-bounds rows of the last block only produce dropped output rows).
    TM = 256 if M >= 256 else max(M, 1)
    # N: lane dim of B / output.  Prefer MXU-width 256 when it divides, else 128, else full N.
    if N % 256 == 0:
        TN = 256
    elif N % 128 == 0:
        TN = 128
    elif N <= 512:
        TN = N
    else:
        TN = 128
    # K: must tile exactly (garbage in an OOB K tail would corrupt the accumulator).
    if K <= _TK_FULL_MAX:
        return TM, TN, K, False
    for cand in _TK_CANDIDATES:
        if K % cand == 0:
            return TM, TN, cand, False
    return TM, TN, 512, True          # rare fallback: pad K up to a multiple of 512


@functools.partial(jax.jit, static_argnames=("relu", "out_dtype"))
def pallas_gemm(a, b, scale, shift, relu, out_dtype):
    """out[m, n] = maybe_relu( (sum_k a[m,k] * b[k,n]) * scale[n] + shift[n] )."""
    M, K = a.shape
    _, N = b.shape
    a = a.astype(jnp.bfloat16)
    b = b.astype(jnp.bfloat16)
    scale = scale.reshape(1, N).astype(jnp.float32)
    shift = shift.reshape(1, N).astype(jnp.float32)

    TM, TN, TK, pad_k = _choose_tiles(M, K, N)
    if pad_k:
        Kp = _ceil_to(K, TK)
        a = jnp.pad(a, ((0, 0), (0, Kp - K)))
        b = jnp.pad(b, ((0, Kp - K), (0, 0)))
        K = Kp

    gm, gn, gk = pl.cdiv(M, TM), pl.cdiv(N, TN), K // TK

    if gk == 1:
        kernel = functools.partial(_gemm_kernel_single, relu=relu)
        grid = (gm, gn)
        in_specs = [
            pl.BlockSpec((TM, TK), lambda i, j: (i, 0)),
            pl.BlockSpec((TK, TN), lambda i, j: (0, j)),
            pl.BlockSpec((1, TN), lambda i, j: (0, j)),
            pl.BlockSpec((1, TN), lambda i, j: (0, j)),
        ]
        out_specs = pl.BlockSpec((TM, TN), lambda i, j: (i, j))
        scratch = []
        dims = ("parallel", "parallel")
    else:
        kernel = functools.partial(_gemm_kernel_multi, relu=relu)
        grid = (gm, gn, gk)
        in_specs = [
            pl.BlockSpec((TM, TK), lambda i, j, k: (i, k)),
            pl.BlockSpec((TK, TN), lambda i, j, k: (k, j)),
            pl.BlockSpec((1, TN), lambda i, j, k: (0, j)),
            pl.BlockSpec((1, TN), lambda i, j, k: (0, j)),
        ]
        out_specs = pl.BlockSpec((TM, TN), lambda i, j, k: (i, j))
        scratch = [pltpu.VMEM((TM, TN), jnp.float32)]
        dims = ("parallel", "parallel", "arbitrary")

    return pl.pallas_call(
        kernel,
        out_shape=jax.ShapeDtypeStruct((M, N), out_dtype),
        grid_spec=pltpu.PrefetchScalarGridSpec(
            num_scalar_prefetch=0,
            grid=grid,
            in_specs=in_specs,
            out_specs=out_specs,
            scratch_shapes=scratch),
        compiler_params=pltpu.CompilerParams(
            dimension_semantics=dims,
            vmem_limit_bytes=_VMEM_LIMIT),
    )(a, b, scale, shift)


# ----------------------------------------------------------------------------
# Convolution = (reshape | im2col | XLA implicit conv) + Pallas GEMM epilogue
# ----------------------------------------------------------------------------
def _pair(v):
    return (v, v) if isinstance(v, int) else tuple(v)


def im2col_nhwc(x, kh, kw, stride, padding, dilation):
    """x: (N, H, W, C) -> patches (N*Ho*Wo, kh*kw*C), column order (kh, kw, C)."""
    N, H, W, C = x.shape
    sh, sw = stride
    ph, pw = padding
    dh, dw = dilation
    xp = jnp.pad(x, ((0, 0), (ph, ph), (pw, pw), (0, 0)))
    Hp, Wp = H + 2 * ph, W + 2 * pw
    Ho = (Hp - dh * (kh - 1) - 1) // sh + 1
    Wo = (Wp - dw * (kw - 1) - 1) // sw + 1
    cols = []
    for i in range(kh):
        for j in range(kw):
            cols.append(xp[:, i * dh: i * dh + sh * (Ho - 1) + 1: sh,
                           j * dw: j * dw + sw * (Wo - 1) + 1: sw, :])
    patches = jnp.stack(cols, axis=3)                      # (N, Ho, Wo, kh*kw, C)
    return patches.reshape(N * Ho * Wo, kh * kw * C), Ho, Wo


def conv_apply(p, x):
    """x: NHWC activations -> NHWC output with fused bias/BN (+ReLU) epilogue."""
    kh, kw, I, O = p["w_hwio"].shape
    sh, sw = p["stride"]
    ph, pw = p["padding"]
    dh, dw = p["dilation"]
    out_dtype = jnp.float32 if p["out_f32"] else jnp.bfloat16

    xb = x.astype(jnp.bfloat16)
    N, H, W, C = xb.shape

    if (kh, kw) != (1, 1) and N * H * W >= XLA_CONV_MIN_ROWS:
        # Big-spatial early VGG layers: implicit im2col via XLA conv (no kh*kw HBM blow-up).
        y = lax.conv_general_dilated(
            xb, p["w_hwio"], window_strides=(sh, sw),
            padding=((ph, ph), (pw, pw)), rhs_dilation=(dh, dw),
            dimension_numbers=("NHWC", "HWIO", "NHWC"),
            preferred_element_type=jnp.float32)
        y = y * p["scale"] + p["shift"]
        if p["relu"]:
            y = jnp.maximum(y, 0.0)
        return y.astype(out_dtype)

    if (kh, kw) == (1, 1) and (sh, sw) == (1, 1) and (ph, pw) == (0, 0):
        a = xb.reshape(N * H * W, C)                       # 1x1 conv: pure reshape
        Ho, Wo = H, W
    else:
        a, Ho, Wo = im2col_nhwc(xb, kh, kw, (sh, sw), (ph, pw), (dh, dw))

    wmat = p["w_hwio"].reshape(kh * kw * I, O)             # pre-laid-out bf16 weights
    out = pallas_gemm(a, wmat, p["scale"], p["shift"],
                      relu=p["relu"], out_dtype=out_dtype)
    return out.reshape(N, Ho, Wo, O)


# ----------------------------------------------------------------------------
# Parameter construction (deterministic, synthetic)
# ----------------------------------------------------------------------------
class KeyGen:
    def __init__(self, key):
        self._key = key

    def __call__(self):
        self._key, sub = jax.random.split(self._key)
        return sub


def make_bn_vec(kg, c):
    gamma = 1.0 + 0.1 * jax.random.normal(kg(), (c,), jnp.float32)
    beta = 0.02 * jax.random.normal(kg(), (c,), jnp.float32)
    mean = 0.02 * jax.random.normal(kg(), (c,), jnp.float32)
    var = 1.0 + 0.1 * jnp.abs(jax.random.normal(kg(), (c,), jnp.float32))
    scale = gamma / jnp.sqrt(var + 1e-5)
    shift = beta - mean * scale
    return scale, shift


def make_conv(kg, cin, cout, ksize, stride=1, padding=0, dilation=1,
              bias=False, bn=True, relu=True, out_f32=False):
    kh, kw = _pair(ksize)
    fan_in = cin * kh * kw
    w = jax.random.normal(kg(), (cout, cin, kh, kw), jnp.float32) * math.sqrt(2.0 / fan_in)
    b = (0.01 * jax.random.normal(kg(), (cout,), jnp.float32)) if bias \
        else jnp.zeros((cout,), jnp.float32)
    if bn:  # inference-mode BatchNorm folded into the GEMM epilogue
        bscale, bshift = make_bn_vec(kg, cout)
        scale = bscale
        shift = b * bscale + bshift
    else:
        scale = jnp.ones((cout,), jnp.float32)
        shift = b
    # Weight pre-transposed once: OIHW -> HWIO (kh, kw, Cin, Cout), cast to bf16.
    w_hwio = jnp.transpose(w, (2, 3, 1, 0)).astype(jnp.bfloat16)
    return dict(w_hwio=w_hwio, scale=scale, shift=shift, relu=relu, out_f32=out_f32,
                stride=_pair(stride), padding=_pair(padding), dilation=_pair(dilation))


def build_base(kg):
    cfg = [64, 64, 'M', 128, 128, 'M', 256, 256, 256, 'C',
           512, 512, 512, 'M', 512, 512, 512]
    layers = []
    cin = 3
    for v in cfg:
        if v == 'M':
            layers.append(("pool", dict(k=2, s=2, pad=0, ceil=False)))
        elif v == 'C':
            layers.append(("pool", dict(k=2, s=2, pad=0, ceil=True)))
        else:
            layers.append(("conv", make_conv(kg, cin, v, 3, stride=1, padding=1,
                                             bias=True, bn=False, relu=False)))
            layers.append(("relu", None))
            cin = v
    layers.append(("pool", dict(k=3, s=1, pad=1, ceil=False)))                       # pool5
    layers.append(("conv", make_conv(kg, 512, 1024, 3, padding=6, dilation=6,
                                     bias=True, bn=False, relu=False)))              # conv6
    layers.append(("relu", None))
    layers.append(("conv", make_conv(kg, 1024, 1024, 1, bias=True, bn=False, relu=False)))  # conv7
    layers.append(("relu", None))
    return layers


# TODO(synk): PriorBox / COCO_300 are not defined in the reference snippet; the standard
# SSD300-style prior-box generation with the RFBNet-style COCO_300 constants is used instead.
COCO_300 = dict(
    feature_maps=[38, 19, 10, 5, 3, 1], min_dim=300,
    steps=[8, 16, 32, 64, 100, 300],
    min_sizes=[21, 45, 99, 153, 207, 261],
    max_sizes=[45, 99, 153, 207, 261, 315],
    aspect_ratios=[[2, 3], [2, 3], [2, 3], [2, 3], [2], [2]],
    clip=True,
)


def priorbox_coco300():
    cfg = COCO_300
    mean = []
    for k, f in enumerate(cfg["feature_maps"]):
        f_k = cfg["min_dim"] / cfg["steps"][k]
        s_k = cfg["min_sizes"][k] / cfg["min_dim"]
        s_k_prime = math.sqrt(s_k * (cfg["max_sizes"][k] / cfg["min_dim"]))
        for i in range(f):
            for j in range(f):
                cx = (j + 0.5) / f_k
                cy = (i + 0.5) / f_k
                mean += [cx, cy, s_k, s_k]
                mean += [cx, cy, s_k_prime, s_k_prime]
                for ar in cfg["aspect_ratios"][k]:
                    r = math.sqrt(ar)
                    mean += [cx, cy, s_k * r, s_k / r]
                    mean += [cx, cy, s_k / r, s_k * r]
    out = np.asarray(mean, dtype=np.float32).reshape(-1, 4)
    if cfg["clip"]:
        out = np.clip(out, 0.0, 1.0)
    return jnp.asarray(out)


def build_params(key):
    kg = KeyGen(key)
    P = {}
    P["base"] = build_base(kg)
    P["Norm1"] = make_conv(kg, 512, 512, 3, padding=1)
    P["Norm2"] = make_conv(kg, 1024, 1024, 3, padding=1)
    P["Norm3"] = make_conv(kg, 512, 512, 3, padding=1)
    P["Norm4"] = make_conv(kg, 256, 256, 3, padding=1)
    # icn1 = LSN_init(3, 512)
    P["icn1_a"] = [make_conv(kg, 3, 128, 3, padding=1),
                   make_conv(kg, 128, 128, 1),
                   make_conv(kg, 128, 128, 3, padding=1)]
    P["icn1_b"] = make_conv(kg, 128, 512, 1, relu=False)
    # icn2 = LSN_later(128, 1024, stride=2)
    P["icn2_a"] = make_conv(kg, 128, 256, 3, stride=2, padding=1)
    P["icn2_b"] = make_conv(kg, 256, 1024, 1, relu=False)
    # icn3 = LSN_later(256, 512, stride=2)
    P["icn3_a"] = make_conv(kg, 256, 128, 3, stride=2, padding=1)
    P["icn3_b"] = make_conv(kg, 128, 512, 1, relu=False)
    P["dsc1"] = make_conv(kg, 512, 1024, 3, stride=2, padding=1, relu=False)
    P["dsc2"] = make_conv(kg, 1024, 512, 3, stride=2, padding=1, relu=False)
    P["dsc3"] = make_conv(kg, 512, 256, 3, stride=2, padding=1, relu=False)
    P["agent1"] = make_conv(kg, 512, 256, 1)
    P["agent2"] = make_conv(kg, 1024, 512, 1)
    P["agent3"] = make_conv(kg, 512, 256, 1)
    P["proj1"] = make_conv(kg, 1024, 128, 1)
    P["proj2"] = make_conv(kg, 512, 128, 1)
    P["proj3"] = make_conv(kg, 256, 128, 1)
    P["convert1"] = make_conv(kg, 384, 256, 1)
    P["convert2"] = make_conv(kg, 256, 512, 1)
    P["convert3"] = make_conv(kg, 128, 256, 1)
    P["merge1"] = make_conv(kg, 512, 512, 3, padding=1)
    P["merge2"] = make_conv(kg, 1024, 1024, 3, padding=1)
    P["merge3"] = make_conv(kg, 512, 512, 3, padding=1)
    P["ibn1"] = make_bn_vec(kg, 512)
    P["ibn2"] = make_bn_vec(kg, 1024)

    def otc(cin, cout, stride):  # One_Three_Conv
        inter = cin // 4
        return [make_conv(kg, cin, inter, 1),
                make_conv(kg, inter, cout, 3, stride=stride, padding=1, relu=False)]

    P["extras"] = [
        ("otc", otc(1024, 512, 2)),
        ("relu", None),
        ("otc", otc(512, 256, 2)),
        ("relu", None),
        ("cb", make_conv(kg, 256, 128, 1)),
        ("cb", make_conv(kg, 128, 256, 3)),
        ("cb", make_conv(kg, 256, 128, 1)),
        ("cb", make_conv(kg, 128, 256, 3)),
    ]

    # loc and conf heads fused into one conv per source (shared patches, wider output).
    mbox = [6, 6, 6, 6, 4, 4]
    src_ch = [512, 1024, 512, 256, 256, 256]
    P["head"] = []
    for c, m in zip(src_ch, mbox):
        fused = make_conv(kg, c, m * 4 + m * NUM_CLASSES, 3, padding=1,
                          bias=True, bn=False, relu=False, out_f32=True)
        P["head"].append(dict(conv=fused, loc_ch=m * 4))
    P["anchors"] = priorbox_coco300()
    return P


# ----------------------------------------------------------------------------
# JAX glue ops (pool / relu / BN / upsample) -- NHWC
# ----------------------------------------------------------------------------
def relu(x):
    return jnp.maximum(x, 0.0)


def maxpool2d(x, k, s, pad=0, ceil=False):
    _, H, W, _ = x.shape

    def osz(n):
        eff = n + 2 * pad - k
        return (-(-eff // s) if ceil else eff // s) + 1

    Ho, Wo = osz(H), osz(W)
    extra_h = (Ho - 1) * s + k - H - pad
    extra_w = (Wo - 1) * s + k - W - pad
    if extra_h < 0:
        x = x[:, : H + extra_h, :, :]
        extra_h = 0
    if extra_w < 0:
        x = x[:, :, : W + extra_w, :]
        extra_w = 0
    neg = jnp.array(-jnp.inf, x.dtype)
    return lax.reduce_window(
        x, neg, lax.max,
        window_dimensions=(1, k, k, 1), window_strides=(1, s, s, 1),
        padding=((0, 0), (pad, extra_h), (pad, extra_w), (0, 0)))


def upsample_bilinear(x, size):
    N, _, _, C = x.shape
    return jax_image.resize(x, (N, size[0], size[1], C), method="bilinear")


def apply_base_layer(layer, x):
    kind, p = layer
    if kind == "conv":
        return conv_apply(p, x)
    if kind == "relu":
        return relu(x)
    return maxpool2d(x, p["k"], p["s"], p["pad"], p["ceil"])


def apply_ibn(bn, x):
    scale, shift = bn
    return x * scale[None, None, None, :] + shift[None, None, None, :]


def apply_relu_conv(p, x):  # Relu_Conv
    return conv_apply(p, relu(x))


def apply_extra(layer, x):
    kind, p = layer
    if kind == "otc":
        return conv_apply(p[1], conv_apply(p[0], x))
    if kind == "relu":
        return relu(x)
    return conv_apply(p, x)


def lds(x):  # LDS
    x = maxpool2d(x, 2, 2, 0, False)
    x = maxpool2d(x, 2, 2, 0, False)
    x = maxpool2d(x, 2, 2, 1, False)
    return x


# ----------------------------------------------------------------------------
# LRF300 forward
# ----------------------------------------------------------------------------
def lrf300_forward(P, x_nchw, is_training=False):
    # activations are kept NHWC / bf16 internally
    x = jnp.transpose(x_nchw, (0, 2, 3, 1)).astype(jnp.bfloat16)

    sources, new_sources, loc_list, conf_list = [], [], [], []
    base = P["base"]

    x_pool = lds(x)
    h = x
    for k in range(22):
        h = apply_base_layer(base[k], h)
    conv4_3_bn = apply_ibn(P["ibn1"], h)

    t = x_pool
    for cp in P["icn1_a"]:
        t = conv_apply(cp, t)
    x_pool1_skip = t
    x_pool1_icn = conv_apply(P["icn1_b"], t)
    s = apply_relu_conv(P["Norm1"], conv4_3_bn * x_pool1_icn)

    for k in range(22, 34):
        h = apply_base_layer(base[k], h)
    conv7_bn = apply_ibn(P["ibn2"], h)
    x_pool2_skip = conv_apply(P["icn2_a"], x_pool1_skip)
    x_pool2_icn = conv_apply(P["icn2_b"], x_pool2_skip)
    p = apply_relu_conv(P["Norm2"], conv_apply(P["dsc1"], s) + conv7_bn * x_pool2_icn)

    h = apply_base_layer(base[34], h)
    w = q = None
    for k, layer in enumerate(P["extras"]):
        h = apply_extra(layer, h)
        if k == 0:
            x_pool3_skip = conv_apply(P["icn3_a"], x_pool2_skip)
            x_pool3_icn = conv_apply(P["icn3_b"], x_pool3_skip)
            w = apply_relu_conv(P["Norm3"], conv_apply(P["dsc2"], p) + h * x_pool3_icn)
        elif k == 2:
            q = apply_relu_conv(P["Norm4"], conv_apply(P["dsc3"], w) + h)
            sources.append(q)
        elif k in (5, 7):
            sources.append(h)

    tmp1 = conv_apply(P["proj1"], p)
    tmp2 = conv_apply(P["proj2"], w)
    tmp3 = conv_apply(P["proj3"], q)

    proj1 = upsample_bilinear(tmp1, (38, 38))
    proj2 = upsample_bilinear(tmp2, (38, 38))
    proj3 = upsample_bilinear(tmp3, (38, 38))
    proj = jnp.concatenate([proj1, proj2, proj3], axis=-1)
    pred1 = conv_apply(P["merge1"],
                       jnp.concatenate([conv_apply(P["agent1"], s),
                                        conv_apply(P["convert1"], proj)], axis=-1))
    new_sources.append(pred1)

    proj2 = upsample_bilinear(tmp2, (19, 19))
    proj3 = upsample_bilinear(tmp3, (19, 19))
    proj = jnp.concatenate([proj2, proj3], axis=-1)
    pred2 = conv_apply(P["merge2"],
                       jnp.concatenate([conv_apply(P["agent2"], p),
                                        conv_apply(P["convert2"], proj)], axis=-1))
    new_sources.append(pred2)

    proj3 = upsample_bilinear(tmp3, (10, 10))
    pred3 = conv_apply(P["merge3"],
                       jnp.concatenate([conv_apply(P["agent3"], w),
                                        conv_apply(P["convert3"], proj3)], axis=-1))
    new_sources.append(pred3)

    new_sources.extend(sources)

    B = x.shape[0]
    for src, hp in zip(new_sources, P["head"]):
        y = conv_apply(hp["conv"], src)       # (B, H, W, m*4 + m*NUM_CLASSES), f32
        nl = hp["loc_ch"]
        loc_list.append(y[..., :nl].reshape(B, -1))
        conf_list.append(y[..., nl:].reshape(B, -1))
    loc = jnp.concatenate(loc_list, axis=1).reshape(B, -1, 4)
    conf = jnp.concatenate(conf_list, axis=1).reshape(B, -1, NUM_CLASSES)
    if not is_training:
        conf = jax.nn.softmax(conf, axis=-1)
    return conf, loc, P["anchors"]


if __name__ == "__main__":
    key = jax.random.PRNGKey(0)
    pkey, xkey = jax.random.split(key)
    params = build_params(pkey)
    # The architecture hard-codes the 300x300 -> 38/19/10/5/3/1 feature pyramid, so the
    # spatial size cannot be shrunk; batch=1 keeps the run small.
    x = jax.random.normal(xkey, (1, 3, 300, 300), jnp.float32)
    conf, loc, anchors = lrf300_forward(params, x, is_training=False)
    jax.block_until_ready((conf, loc, anchors))
    assert conf.shape == (1, 11620, NUM_CLASSES), conf.shape
    assert loc.shape == (1, 11620, 4), loc.shape
    assert anchors.shape == (11620, 4), anchors.shape
    print("KERNEL_OK")
</pallas_src>

<mosaic_0001>
module attributes {stable_mosaic.version = 11 : i64} {
  func.func @_gemm_kernel_single(%arg0: i32, %arg1: i32, %arg2: memref<256x1152xbf16, #tpu.memory_space<vmem>>, %arg3: memref<1152x256xbf16, #tpu.memory_space<vmem>>, %arg4: memref<1x256xf32, #tpu.memory_space<vmem>>, %arg5: memref<1x256xf32, #tpu.memory_space<vmem>>, %arg6: memref<256x256xbf16, #tpu.memory_space<vmem>>) attributes {dimension_semantics = [#tpu.dimension_semantics<parallel>, #tpu.dimension_semantics<parallel>], iteration_bounds = array<i64: 22, 1>, scalar_prefetch = 0 : i64, scratch_operands = 0 : i64, tpu.core_type = #tpu.core_type<tc>, window_params = [{transform_indices = @transform_0, window_bounds = array<i64: 256, 1152>}, {transform_indices = @transform_1, window_bounds = array<i64: 1152, 256>}, {transform_indices = @transform_2, window_bounds = array<i64: 1, 256>}, {transform_indices = @transform_3, window_bounds = array<i64: 1, 256>}, {transform_indices = @transform_4, window_bounds = array<i64: 256, 256>}]} {
    %c0 = arith.constant 0 : index
    %c0_0 = arith.constant 0 : index
    %0 = vector.load %arg2[%c0, %c0_0] : memref<256x1152xbf16, #tpu.memory_space<vmem>>, vector<256x1152xbf16>
    %c0_1 = arith.constant 0 : index
    %c0_2 = arith.constant 0 : index
    %1 = vector.load %arg3[%c0_1, %c0_2] : memref<1152x256xbf16, #tpu.memory_space<vmem>>, vector<1152x256xbf16>
    %cst = arith.constant dense<0.000000e+00> : vector<256x256xf32>
    %2 = tpu.matmul %0, %1, %cst {dimension_numbers = #tpu.dot_dimension_numbers<[1], [0], [0], [1], [0, 0, 1, 1], [], []>} : vector<256x1152xbf16>, vector<1152x256xbf16>, vector<256x256xf32> -> vector<256x256xf32>
    %c0_3 = arith.constant 0 : index
    %c0_4 = arith.constant 0 : index
    %3 = vector.load %arg4[%c0_3, %c0_4] : memref<1x256xf32, #tpu.memory_space<vmem>>, vector<1x256xf32>
    %4 = vector.broadcast %3 : vector<1x256xf32> to vector<256x256xf32>
    %5 = arith.mulf %2, %4 : vector<256x256xf32>
    %c0_5 = arith.constant 0 : index
    %c0_6 = arith.constant 0 : index
    %6 = vector.load %arg5[%c0_5, %c0_6] : memref<1x256xf32, #tpu.memory_space<vmem>>, vector<1x256xf32>
    %7 = vector.broadcast %6 : vector<1x256xf32> to vector<256x256xf32>
    %8 = arith.addf %5, %7 : vector<256x256xf32>
    %9 = arith.truncf %8 : vector<256x256xf32> to vector<256x256xbf16>
    %c0_7 = arith.constant 0 : index
    %c0_8 = arith.constant 0 : index
    %10 = vector.load %arg6[%c0_7, %c0_8] : memref<256x256xbf16, #tpu.memory_space<vmem>>, vector<256x256xbf16>
    tpu.vector_store %arg6[%c0_7, %c0_8], %9 {strides = array<i32>} : memref<256x256xbf16, #tpu.memory_space<vmem>>, vector<256x256xbf16>,
    return
  }
  func.func @transform_0(%arg0: i32, %arg1: i32) -> (i32, i32) {
    %c0_i32 = arith.constant 0 : i32
    %c0_i32_0 = arith.constant 0 : i32
    return %arg0, %c0_i32 : i32, i32
  }
  func.func @transform_1(%arg0: i32, %arg1: i32) -> (i32, i32) {
    %c0_i32 = arith.constant 0 : i32
    %c0_i32_0 = arith.constant 0 : i32
    return %c0_i32, %arg1 : i32, i32
  }
  func.func @transform_2(%arg0: i32, %arg1: i32) -> (i32, i32) {
    %c0_i32 = arith.constant 0 : i32
    %c0_i32_0 = arith.constant 0 : i32
    return %c0_i32, %arg1 : i32, i32
  }
  func.func @transform_3(%arg0: i32, %arg1: i32) -> (i32, i32) {
    %c0_i32 = arith.constant 0 : i32
    %c0_i32_0 = arith.constant 0 : i32
    return %c0_i32, %arg1 : i32, i32
  }
  func.func @transform_4(%arg0: i32, %arg1: i32) -> (i32, i32) {
    %c0_i32 = arith.constant 0 : i32
    return %arg0, %arg1 : i32, i32
  }
}

</mosaic_0001>

<bundles_post_ra>
// kernel: pallas_gemm.1
= control target key start
LH: loop header
LB: loop body
LE: loop exit
PB: predicated region body
PF: predicated region fallthrough
CT: control target
= control target key end

     0   :  { %9 = vsyncpa [#allocation3], 0  ;;  %s5692_s0 = inlined_call_operand.hbm [shape: bf16[5625,1152], index: 0, kind: input, shape index: {}]   ;;  %s5693_s1 = inlined_call_operand.hbm [shape: bf16[1152,256], index: 1, kind: input, shape index: {}]   ;;  %s5694_s2 = inlined_call_operand.hbm [shape: f32[1,256], index: 2, kind: input, shape index: {}]   ;;  %s5695_s3 = inlined_call_operand.hbm [shape: f32[1,256], index: 3, kind: input, shape index: {}]   ;;  %s5696_s4 = inlined_call_operand.hbm [shape: bf16[5625,256], index: 4, kind: output, shape index: {}]  }
   0x1   :  { %11 = vsyncpa [#allocation3 + $0x1], 0 }
   0x2   :  { %12 = vsyncpa [#allocation6], 0 }
   0x3   :  { %13 = vsyncpa [#allocation9], 0 }
   0x4   :  { %14 = vsyncpa [#allocation4], 0 }
   0x5   :  { %16 = vsyncpa [#allocation4 + $0x1], 0  ;;  %s5004_s15 = smov 0   ;;  %s5006_s16 = smov 0  }
   0x6   :  { %s5008_s17 = smov 0   ;;  %s5010_s18 = smov 0  }
   0x7   :  { %s5012_s19 = smov 0   ;;  %s5014_s20 = smov 0  }
   0x8 LB: > { %s3539_s21 = sadd.s32 4294967295, %s4965_s20   ;;  %s3540_s22 = sadd.s32 4294967294, %s4965_s20   ;;  %s4965_s20 = sphi %s5014_s20, %s22_s20   ;;  %s4961_s19 = sphi %s5012_s19, %s5722_s19   ;;  %s4957_s18 = sphi %s5010_s18, %s5721_s18   ;;  %s4953_s17 = sphi %s5008_s17, %s5720_s17   ;;  %s4949_s16 = sphi %s5006_s16, %s5719_s16   ;;  %s4945_s15 = sphi %s5004_s15, %s5718_s15  }
   0x9   : > { %p54_p0 = scmp.ne.s32.totalorder %s4949_s16, %s4945_s15  ;;  %p5038_p1 = scmp.eq.s32.totalorder %s3539_s21, 0 }
   0xa   : > { %p5042_p2 = scmp.eq.s32.totalorder %s3539_s21, 21  ;;  %p164_p3 = scmp.eq.s32.totalorder %s3540_s22, 21 }
   0xb   : > { %s5702_s23 = scalar_select %p5038_p1, 1, 0 }
   0xc   : > { %s5703_s24 = scalar_select %p5042_p2, 1, 0 }
   0xd   : > { %p5048_p4 = por %p5038_p1, %p54_p0  ;;  %p3541_p5 = scmp.ge.s32.totalorder %s4965_s20, 1 }
   0xe   : > { %p5053_p6 = por %p164_p3, %p54_p0  ;;  %p171_p7 = scmp.lt.s32.totalorder %s4965_s20, 23 }
   0xf   : > { %s5704_s25 = scalar_select %p5048_p4, 1, 0 }
  0x10   : > { %s5705_s26 = scalar_select %p5053_p6, 1, 0 }
  0x11   : > { %p5058_p8 = pnand %p3541_p5, %p171_p7  ;;  %s4967_s28 = smov [#allocation5]  }
  0x12   : > { %5706 = sst [smem:[#allocation15_spill]] %s5705_s26  ;;  %s186_s29 = sshll.u32 %s4967_s28, 4  ;;  %s5062_s29 = int_to_ptr.vmem [resolvable:$true] %s186_s29 }
  0x13   : > { %s5707_s27 = scalar_select %p5058_p8, 1, 0 }
  0x14   : > { %p4221_p9 = pneg %p5058_p8  ;;  %s4968_s5 = smov [#allocation7]  }
  0x15   : > { %s203_s6 = sshll.u32 %s4968_s5, 4  ;;  %s4969_s7 = smov [#allocation8]   ;;  %s5072_s6 = int_to_ptr.vmem [resolvable:$true] %s203_s6 }
  0x16   : > { %p5068_p10 = pnand %p4221_p9, %p5038_p1  ;;  %s5074_s8 = sshll.u32 %s4969_s7, 4  ;;  %s218_s8 = int_to_ptr.vmem [resolvable:$true] %s5074_s8 }
  0x17   : > { %s4761_s11 = scalar_lea.hbm %s5693_s1, 18432 }
  0x18   : > { %p4762_p11 = scmp.ne.s32.totalorder %s5693_s1, %s4761_s11  ;;  %p5084_p12 = pneg %p5068_p10 }
  0x19   : > { %p4768_p3 = scmp.lt.u32.totalorder %s4761_s11, %s5693_s1 }
  0x1a   : > { %p4764_p13 = pnand %p5084_p12, %p4762_p11 }
  0x1c   : > { %p4765_p0 = pneg %p4764_p13 }
  0x1e   : > { %p4770_p5 = pnand %p4768_p3, %p4765_p0 }
  0x20   : > { %4773 = shalt.err (!%p4770_p5)
}
  0x21   : > { %s4774_s28 = scalar_lea.vmem %s5062_s29, 18432  ;;  %p4782_p1 = scmp.lt.s32.totalorder %s5062_s29, %s5062_s29 }
  0x22   : > { %p4775_p7 = scmp.ne.s32.totalorder %s5062_s29, %s4774_s28  ;;  %p4783_p4 = scmp.lt.s32.totalorder %s4774_s28, %s4774_s28 }
  0x24   : > { %p4777_p9 = pnand %p4775_p7, %p5084_p12  ;;  %p4784_p11 = por %p4783_p4, %p4782_p1 }
  0x26   : > { %p4778_p6 = pneg %p4777_p9 }
  0x28   : > { %p4785_p13 = pnand %p4784_p11, %p4778_p6 }
  0x2a   : > { %4788 = shalt.err (!%p4785_p13)
}
  0x2b   : > { %s4970_s5 = smov 128   ;;  %s4971_s7 = smov 8  }
  0x2c   : > { %4224 = dma.hbm_to_vmem [thread:$0]  (!%p5068_p10), %s5693_s1, 18432, %s5062_s29, [#allocation6], %s4970_s5, %s4970_s5, %s4971_s7  }
  0x2d   : > { %s4789_s13 = scalar_lea.hbm %s5694_s2, 32 }
  0x2e   : > { %p4790_p1 = scmp.ne.s32.totalorder %s5694_s2, %s4789_s13  ;;  %p4796_p0 = scmp.lt.u32.totalorder %s4789_s13, %s5694_s2 }
  0x30   : > { %p4792_p4 = pnand %p4790_p1, %p5084_p12 }
  0x32   : > { %p4793_p6 = pneg %p4792_p4 }
  0x34   : > { %p4798_p3 = pnand %p4796_p0, %p4793_p6 }
  0x36   : > { %4801 = shalt.err (!%p4798_p3)
}
  0x37   : > { %s4802_s29 = scalar_lea.vmem %s5072_s6, 32  ;;  %p4810_p11 = scmp.lt.s32.totalorder %s5072_s6, %s5072_s6 }
  0x38   : > { %p4803_p5 = scmp.ne.s32.totalorder %s5072_s6, %s4802_s29  ;;  %p4811_p13 = scmp.lt.s32.totalorder %s4802_s29, %s4802_s29 }
  0x3a   : > { %p4805_p7 = pnand %p4803_p5, %p5084_p12  ;;  %p4812_p1 = por %p4811_p13, %p4810_p11 }
  0x3c   : > { %p4806_p9 = pneg %p4805_p7 }
  0x3e   : > { %p4813_p4 = pnand %p4812_p1, %p4806_p9 }
  0x40   : > { %4816 = shalt.err (!%p4813_p4)
}
  0x41   : > { %4227 = dma.hbm_to_vmem [thread:$0]  (!%p5068_p10), %s5694_s2, 32, %s5072_s6, [#allocation6]  }
  0x42   : > { %s4817_s10 = scalar_lea.hbm %s5695_s3, 32 }
  0x43   : > { %p4818_p6 = scmp.ne.s32.totalorder %s5695_s3, %s4817_s10  ;;  %p4824_p5 = scmp.lt.u32.totalorder %s4817_s10, %s5695_s3 }
  0x45   : > { %p4820_p0 = pnand %p4818_p6, %p5084_p12 }
  0x47   : > { %p4821_p3 = pneg %p4820_p0 }
  0x49   : > { %p4826_p7 = pnand %p4824_p5, %p4821_p3 }
  0x4b   : > { %4829 = shalt.err (!%p4826_p7)
}
  0x4c   : > { %s4830_s22 = scalar_lea.vmem %s218_s8, 32  ;;  %p4838_p1 = scmp.lt.s32.totalorder %s218_s8, %s218_s8 }
  0x4d   : > { %p4831_p9 = scmp.ne.s32.totalorder %s218_s8, %s4830_s22  ;;  %p4839_p4 = scmp.lt.s32.totalorder %s4830_s22, %s4830_s22 }
  0x4f   : > { %p4833_p11 = pnand %p4831_p9, %p5084_p12  ;;  %p4840_p8 = por %p4839_p4, %p4838_p1 }
  0x51   : > { %p4834_p13 = pneg %p4833_p11 }
  0x53   : > { %p4841_p2 = pnand %p4840_p8, %p4834_p13 }
  0x55   : > { %4844 = shalt.err (!%p4841_p2)
}
  0x56   : > { %4230 = dma.hbm_to_vmem [thread:$0]  (!%p5068_p10), %s5695_s3, 32, %s218_s8, [#allocation9]  }
  0x57   : > { %s41_s14 = sadd.s32 1, %s4953_s17  ;;  %s34_s29 = sadd.s32 1, %s4961_s19 }
  0x58   : > { %p48_p2 = scmp.ne.s32.totalorder %s4953_s17, %s4949_s16  ;;  %p36_p8 = scmp.ge.s32.totalorder %s34_s29, 22 }
  0x59   : > { %p49_p12 = scmp.eq.s32.totalorder %s4965_s20, 0  ;;  %p5710_p6 = scmp.ne.s32.totalorder %s5703_s24, 0 }
  0x5a   : > { %p4242_p3 = scmp.lt.s32.totalorder %s4965_s20, 22  ;;  %s5724_s29 = smov (%p36_p8, %s34_s29), 0 }
  0x5b   : > { %p5154_p0 = por %p5710_p6, %p48_p2  ;;  %p50_p5 = por %p49_p12, %p48_p2 }
  0x5c   : > { %s228_s26 = sand.u32 1, %s4953_s17   ;;  %s38_s5 = ssub.s32 %s4961_s19, %s5724_s29 }
  0x5d   : > { %p39_p7 = scmp.eq.s32.totalorder %s38_s5, 0  ;;  %s4202_s8 = smul.u32 1152, %s228_s26 }
  0x5e   : > { %s4203_s7 = smul.u32 18432, %s4961_s19  ;;  %p5165_p10 = pnand %p4242_p3, %p50_p5 }
  0x5f   : > { %s5170_s24 = scalar_select %p39_p7, %s4953_s17, %s41_s14  }
  0x60   : > { %s5175_s12 = scalar_lea.hbm %s5692_s0, %s4203_s7  ;;  %s232_s13 = scalar_lea.vmem [#allocation2], %s4202_s8 }
  0x61   : > { %s240_s21 = sshll.u32 %s232_s13, 4  ;;  %s5179_s22 = scalar_lea.sflag [#allocation3], %s228_s26  ;;  %s5177_s21 = int_to_ptr.vmem [resolvable:$true] %s240_s21 }
  0x62   : > { %s4845_s6 = scalar_lea.hbm %s5175_s12, 18432  ;;  %p4847_p11 = pneg %p5165_p10 }
  0x63   : > { %p4846_p9 = scmp.ne.s32.totalorder %s5175_s12, %s4845_s6  ;;  %s4850_s5 = scalar_lea.hbm %s5692_s0, 405504 }
  0x64   : > { %p4851_p4 = scmp.lt.u32.totalorder %s5175_s12, %s5692_s0  ;;  %p4852_p2 = scmp.lt.u32.totalorder %s4850_s5, %s4845_s6 }
  0x65   : > { %p4848_p13 = pnand %p4847_p11, %p4846_p9  ;;  %p4854_p12 = scmp.lt.u32.totalorder %s4845_s6, %s5175_s12 }
  0x66   : > { %p4853_p8 = por %p4852_p2, %p4851_p4 }
  0x67   : > { %p4849_p1 = pneg %p4848_p13 }
  0x68   : > { %p4855_p6 = por %p4854_p12, %p4853_p8 }
  0x6a   : > { %p4856_p3 = pnand %p4855_p6, %p4849_p1 }
  0x6c   : > { %4859 = shalt.err (!%p4856_p3)
}
  0x6d   : > { %s4860_s26 = scalar_lea.vmem %s5177_s21, 18432  ;;  %s4972_s8 = smov [#allocation2]  }
  0x6e   : > { %p4861_p5 = scmp.ne.s32.totalorder %s5177_s21, %s4860_s26  ;;  %s4865_s11 = sshll.u32 %s4972_s8, 4  ;;  %s4866_s11 = int_to_ptr.vmem [resolvable:$false] %s4865_s11 }
  0x6f   : > { %s4867_s13 = scalar_lea.vmem %s4866_s11, 36864  ;;  %p4868_p13 = scmp.lt.s32.totalorder %s5177_s21, %s4866_s11 }
  0x70   : > { %p4863_p7 = pnand %p4861_p5, %p4847_p11  ;;  %p4869_p4 = scmp.lt.s32.totalorder %s4867_s13, %s4860_s26 }
  0x72   : > { %p4864_p9 = pneg %p4863_p7  ;;  %p4870_p2 = por %p4869_p4, %p4868_p13 }
  0x74   : > { %p4871_p8 = pnand %p4870_p2, %p4864_p9 }
  0x76   : > { %4874 = shalt.err (!%p4871_p8)
}
  0x77   : > { %s4973_s6 = smov 576   ;;  %s4974_s28 = smov 36  }
  0x78   : > { %4234 = dma.hbm_to_vmem [thread:$0]  (!%p5165_p10), %s5175_s12, 18432, %s5177_s21, %s5179_s22, %s4973_s6, %s4973_s6, %s4974_s28  }
  0x79   : > { %p5713_p11 = scmp.ne.s32.totalorder %s5707_s27, 0 }
  0x7a   : > { %s5210_s14 = sand.u32 (!%p5713_p11), 1, %s4949_s16   ;;  %p5714_p1 = scmp.ne.s32.totalorder (!%p5713_p11), %s5704_s25, 0 }
  0x7b   : > { %252 = sbr.rel (%p5713_p11) target bundleno = 752 (0x2f0), region = 36  ;;  %s255_s7 = scalar_lea.sflag (!%p5713_p11), [#allocation3], %s5210_s14 }
  0x7c   : > { %s4204_s5 = smul.u32 (!%p5713_p11), 1152, %s5210_s14 }
  0x7e   : > { %s5214_s10 = scalar_lea.vmem (!%p5713_p11), [#allocation2], %s4204_s5 }
  0x82   : > { %4928 = dma.done.wait (%p5714_p1), %s255_s7, 18432  }
  0x83   : > { %4930 = vsyncadd (%p5714_p1), %s255_s7, 4294948864  ;;  %p5715_p10 = scmp.ne.s32.totalorder %s5702_s23, 0 }
  0x85   : > { %4932 = dma.done.wait (%p5715_p10), [#allocation6], 18464  }
  0x86   : > { %4934 = vsyncadd (%p5715_p10), [#allocation6], 4294948832 }
  0x87   : > { %4936 = dma.done.wait (%p5715_p10), [#allocation9], 32  }
  0x88   : > { %4938 = vsyncadd (%p5715_p10), [#allocation9], 4294967264  ;;  %v4305_v0 = vld [vmem:[#allocation5 + $0x4] ss:$8 sps:$4 sm:$0xff]   ;;  %v4309_v2 = vld [vmem:[#allocation5] ss:$8 sps:$4 sm:$0xff]  }
  0x89   : > { %v4307_v1 = vld [vmem:[#allocation5 + $0x204] ss:$8 sps:$4 sm:$0xff]   ;;  %2062 = vmatprep.subr.bf16.mxu1 %v4305_v0  ;;  %v4310_v3 = vld [vmem:[#allocation5 + $0x200] ss:$8 sps:$4 sm:$0xff]   ;;  %v4311_v4 = vld [vmem:[#allocation5 + $0x14] ss:$8 sps:$4 sm:$0xff]  }
  0x8a   : > { %2448 = vmatprep.subr.bf16.mxu0 %v4307_v1  ;;  %2063 = vmatpush1.bf16.msra.mxu1 %v4309_v2  ;;  %v4313_v5 = vld [vmem:[#allocation5 + $0x214] ss:$8 sps:$4 sm:$0xff]   ;;  %v4315_v6 = vld [vmem:[#allocation5 + $0x10] ss:$8 sps:$4 sm:$0xff]   ;;  %v4317_v8 = vld [vmem:[#allocation5 + $0x24] ss:$8 sps:$4 sm:$0xff]  }
  0x8b   : > { %2449 = vmatpush1.bf16.msra.mxu0 %v4310_v3  ;;  %2064 = vmatprep.subr.bf16.mxu1 %v4311_v4  ;;  %v4316_v7 = vld [vmem:[#allocation5 + $0x210] ss:$8 sps:$4 sm:$0xff]   ;;  %v4319_v9 = vld [vmem:[#allocation5 + $0x224] ss:$8 sps:$4 sm:$0xff]   ;;  %v4321_v10 = vld [vmem:[#allocation5 + $0x20] ss:$8 sps:$4 sm:$0xff]  }
  0x8c   : > { %2450 = vmatprep.subr.bf16.mxu0 %v4313_v5  ;;  %v4322_v11 = vld [vmem:[#allocation5 + $0x220] ss:$8 sps:$4 sm:$0xff]   ;;  %v4323_v12 = vld [vmem:[#allocation5 + $0x34] ss:$8 sps:$4 sm:$0xff]   ;;  %v4327_v14 = vld [vmem:[#allocation5 + $0x30] ss:$8 sps:$4 sm:$0xff]  }
  0x8d   : > { %v4325_v13 = vld [vmem:[#allocation5 + $0x234] ss:$8 sps:$4 sm:$0xff]   ;;  %v4328_v15 = vld [vmem:[#allocation5 + $0x230] ss:$8 sps:$4 sm:$0xff]   ;;  %v4329_v16 = vld [vmem:[#allocation5 + $0x44] ss:$8 sps:$4 sm:$0xff]  }
  0x8e   : > { %2065 = vmatpush1.bf16.msra.mxu1 %v4315_v6  ;;  %v4331_v17 = vld [vmem:[#allocation5 + $0x244] ss:$8 sps:$4 sm:$0xff]   ;;  %v4333_v18 = vld [vmem:[#allocation5 + $0x40] ss:$8 sps:$4 sm:$0xff]   ;;  %v4335_v20 = vld [vmem:[#allocation5 + $0x54] ss:$8 sps:$4 sm:$0xff]  }
  0x8f   : > { %2451 = vmatpush1.bf16.msra.mxu0 %v4316_v7  ;;  %2066 = vmatprep.subr.bf16.mxu1 %v4317_v8  ;;  %v4334_v19 = vld [vmem:[#allocation5 + $0x240] ss:$8 sps:$4 sm:$0xff]   ;;  %v4337_v21 = vld [vmem:[#allocation5 + $0x254] ss:$8 sps:$4 sm:$0xff]   ;;  %v4339_v22 = vld [vmem:[#allocation5 + $0x50] ss:$8 sps:$4 sm:$0xff]  }
  0x90   : > { %2452 = vmatprep.subr.bf16.mxu0 %v4319_v9  ;;  %v4340_v23 = vld [vmem:[#allocation5 + $0x250] ss:$8 sps:$4 sm:$0xff]   ;;  %v4341_v24 = vld [vmem:[#allocation5 + $0x64] ss:$8 sps:$4 sm:$0xff]   ;;  %v4345_v26 = vld [vmem:[#allocation5 + $0x60] ss:$8 sps:$4 sm:$0xff]  }
  0x91   : > { %v4343_v25 = vld [vmem:[#allocation5 + $0x264] ss:$8 sps:$4 sm:$0xff]   ;;  %v4346_v27 = vld [vmem:[#allocation5 + $0x260] ss:$8 sps:$4 sm:$0xff]   ;;  %v4347_v28 = vld [vmem:[#allocation5 + $0x74] ss:$8 sps:$4 sm:$0xff]  }
  0x92   : > { %2067 = vmatpush1.bf16.msra.mxu1 %v4321_v10  ;;  %v4349_v29 = vld [vmem:[#allocation5 + $0x274] ss:$8 sps:$4 sm:$0xff]   ;;  %v4351_v30 = vld [vmem:[#allocation5 + $0x70] ss:$8 sps:$4 sm:$0xff]   ;;  %v4353_v32 = vld [vmem:[#allocation5 + $0x84] ss:$8 sps:$4 sm:$0xff]  }
  0x93   : > { %2453 = vmatpush1.bf16.msra.mxu0 %v4322_v11  ;;  %2068 = vmatprep.subr.bf16.mxu1 %v4323_v12  ;;  %v4352_v31 = vld [vmem:[#allocation5 + $0x270] ss:$8 sps:$4 sm:$0xff]   ;;  %v4355_v33 = vld [vmem:[#allocation5 + $0x284] ss:$8 sps:$4 sm:$0xff]   ;;  %v4357_v34 = vld [vmem:[#allocation5 + $0x80] ss:$8 sps:$4 sm:$0xff]  }
  0x94   : > { %2454 = vmatprep.subr.bf16.mxu0 %v4325_v13  ;;  %v4358_v35 = vld [vmem:[#allocation5 + $0x280] ss:$8 sps:$4 sm:$0xff]   ;;  %v4359_v36 = vld [vmem:[#allocation5 + $0x94] ss:$8 sps:$4 sm:$0xff]   ;;  %v4363_v38 = vld [vmem:[#allocation5 + $0x90] ss:$8 sps:$4 sm:$0xff]  }
  0x95   : > { %v4361_v37 = vld [vmem:[#allocation5 + $0x294] ss:$8 sps:$4 sm:$0xff]   ;;  %v4364_v39 = vld [vmem:[#allocation5 + $0x290] ss:$8 sps:$4 sm:$0xff]   ;;  %v4365_v40 = vld [vmem:[#allocation5 + $0xa4] ss:$8 sps:$4 sm:$0xff]  }
  0x96   : > { %2069 = vmatpush1.bf16.msra.mxu1 %v4327_v14  ;;  %v4367_v41 = vld [vmem:[#allocation5 + $0x2a4] ss:$8 sps:$4 sm:$0xff]   ;;  %v4369_v42 = vld [vmem:[#allocation5 + $0xa0] ss:$8 sps:$4 sm:$0xff]   ;;  %v4371_v44 = vld [vmem:[#allocation5 + $0xb4] ss:$8 sps:$4 sm:$0xff]  }
  0x97   : > { %2455 = vmatpush1.bf16.msra.mxu0 %v4328_v15  ;;  %2070 = vmatprep.subr.bf16.mxu1 %v4329_v16  ;;  %v4370_v43 = vld [vmem:[#allocation5 + $0x2a0] ss:$8 sps:$4 sm:$0xff]   ;;  %v4373_v45 = vld [vmem:[#allocation5 + $0x2b4] ss:$8 sps:$4 sm:$0xff]   ;;  %v4375_v46 = vld [vmem:[#allocation5 + $0xb0] ss:$8 sps:$4 sm:$0xff]  }
  0x98   : > { %2456 = vmatprep.subr.bf16.mxu0 %v4331_v17  ;;  %v4376_v47 = vld [vmem:[#allocation5 + $0x2b0] ss:$8 sps:$4 sm:$0xff]   ;;  %v4377_v48 = vld [vmem:[#allocation5 + $0xc4] ss:$8 sps:$4 sm:$0xff]   ;;  %v4381_v52 = vld [vmem:[#allocation5 + $0xc0] ss:$8 sps:$4 sm:$0xff]  }
  0x99   : > { %v4403_v49 = vld [vmem:[%s5214_s10 + $0x4] ss:$36 sps:$4 sm:$0xff]   ;;  %v4406_v51 = vld [vmem:[%s5214_s10 + $0x14] ss:$36 sps:$4 sm:$0xff]   ;;  %v4416_v9 = vld [vmem:[%s5214_s10 + $0x4c] ss:$36 sps:$4 sm:$0xff]  }
  0x9a   : > { %2071 = vmatpush1.bf16.msra.mxu1 %v4333_v18  ;;  %v4379_v50 = vld [vmem:[#allocation5 + $0x2c4] ss:$8 sps:$4 sm:$0xff]   ;;  %2094 = vmatprep.mubr.bf16.mxu1 %v4403_v49  ;;  %v4382_v53 = vld [vmem:[#allocation5 + $0x2c0] ss:$8 sps:$4 sm:$0xff]   ;;  %v4383_v54 = vld [vmem:[#allocation5 + $0xd4] ss:$8 sps:$4 sm:$0xff]  }
  0x9b   : > { %2457 = vmatpush1.bf16.msra.mxu0 %v4334_v19  ;;  %2072 = vmatprep.subr.bf16.mxu1 %v4335_v20  ;;  %v4385_v55 = vld [vmem:[#allocation5 + $0x2d4] ss:$8 sps:$4 sm:$0xff]   ;;  %v4387_v56 = vld [vmem:[#allocation5 + $0xd0] ss:$8 sps:$4 sm:$0xff]   ;;  %v4389_v58 = vld [vmem:[#allocation5 + $0xe4] ss:$8 sps:$4 sm:$0xff]  }
  0x9c   : > { %2458 = vmatprep.subr.bf16.mxu0 %v4337_v21  ;;  %2480 = vmatprep.mubr.bf16.mxu0 %v4406_v51  ;;  %v4388_v57 = vld [vmem:[#allocation5 + $0x2d0] ss:$8 sps:$4 sm:$0xff]   ;;  %v4391_v59 = vld [vmem:[#allocation5 + $0x2e4] ss:$8 sps:$4 sm:$0xff]   ;;  %v4393_v60 = vld [vmem:[#allocation5 + $0xe0] ss:$8 sps:$4 sm:$0xff]  }
  0x9d   : > { %v4394_v61 = vld [vmem:[#allocation5 + $0x2e0] ss:$8 sps:$4 sm:$0xff]   ;;  %v4395_v62 = vld [vmem:[#allocation5 + $0xf4] ss:$8 sps:$4 sm:$0xff]   ;;  %v4399_v0 = vld [vmem:[#allocation5 + $0xf0] ss:$8 sps:$4 sm:$0xff]  }
  0x9e   : > { %2073 = vmatpush1.bf16.msra.mxu1 %v4339_v22  ;;  %v4397_v63 = vld [vmem:[#allocation5 + $0x2f4] ss:$8 sps:$4 sm:$0xff]   ;;  %v4400_v1 = vld [vmem:[#allocation5 + $0x2f0] ss:$8 sps:$4 sm:$0xff]   ;;  %v4409_v2 = vld [vmem:[#allocation5 + $0x104] ss:$8 sps:$4 sm:$0xff]  }
  0x9f   : > { %2459 = vmatpush1.bf16.msra.mxu0 %v4340_v23  ;;  %2074 = vmatprep.subr.bf16.mxu1 %v4341_v24  ;;  %v4412_v3 = vld [vmem:[#allocation5 + $0x304] ss:$8 sps:$4 sm:$0xff]   ;;  %v4404_v5 = vld [vmem:[%s5214_s10 + $0x10] ss:$36 sps:$4 sm:$0xff]   ;;  %v4407_v6 = vld [vmem:[#allocation5 + $0x100] ss:$8 sps:$4 sm:$0xff]  }
  0xa0   : > { %2460 = vmatprep.subr.bf16.mxu0 %v4343_v25  ;;  %v4401_v4 = vld [vmem:[%s5214_s10] ss:$36 sps:$4 sm:$0xff]   ;;  %v4415_v8 = vld [vmem:[#allocation5 + $0x314] ss:$8 sps:$4 sm:$0xff]   ;;  %v4413_v12 = vld [vmem:[#allocation5 + $0x310] ss:$8 sps:$4 sm:$0xff]  }
  0xa1   : > { %v4410_v7 = vld [vmem:[#allocation5 + $0x300] ss:$8 sps:$4 sm:$0xff]   ;;  %v4423_v11 = vld [vmem:[#allocation5 + $0x114] ss:$8 sps:$4 sm:$0xff]   ;;  %v4421_v13 = vld [vmem:[#allocation5 + $0x110] ss:$8 sps:$4 sm:$0xff]  }
  0xa2   : > { %2075 = vmatpush1.bf16.msra.mxu1 %v4345_v26  ;;  %v4418_v10 = vld [vmem:[%s5214_s10 + $0x5c] ss:$36 sps:$4 sm:$0xff]   ;;  %v4427_v14 = vld [vmem:[#allocation5 + $0x324] ss:$8 sps:$4 sm:$0xff]   ;;  %v4431_v20 = vld [vmem:[%s5214_s10 + $0x94] ss:$36 sps:$4 sm:$0xff]  }
  0xa3   : > { %2461 = vmatpush1.bf16.msra.mxu0 %v4346_v27  ;;  %2076 = vmatprep.subr.bf16.mxu1 %v4347_v28  ;;  %v4438_v15 = vld [vmem:[#allocation5 + $0x124] ss:$8 sps:$4 sm:$0xff]   ;;  %v4424_v17 = vld [vmem:[%s5214_s10 + $0x58] ss:$36 sps:$4 sm:$0xff]   ;;  %v4425_v18 = vld [vmem:[#allocation5 + $0x320] ss:$8 sps:$4 sm:$0xff]  }
  0xa4   : > { %2462 = vmatprep.subr.bf16.mxu0 %v4349_v29  ;;  %v4420_v16 = vld [vmem:[%s5214_s10 + $0x48] ss:$36 sps:$4 sm:$0xff]   ;;  %v4430_v19 = vld [vmem:[#allocation5 + $0x334] ss:$8 sps:$4 sm:$0xff]   ;;  %v4428_v24 = vld [vmem:[#allocation5 + $0x330] ss:$8 sps:$4 sm:$0xff]  }
  0xa5   : > { %v4433_v21 = vld [vmem:[%s5214_s10 + $0xa4] ss:$36 sps:$4 sm:$0xff]   ;;  %v4453_v23 = vld [vmem:[#allocation5 + $0x134] ss:$8 sps:$4 sm:$0xff]   ;;  %v4451_v27 = vld [vmem:[#allocation5 + $0x130] ss:$8 sps:$4 sm:$0xff]  }
  0xa6   : > { %2077 = vmatpush1.bf16.msra.mxu1 %v4351_v30  ;;  %v4436_v22 = vld [vmem:[#allocation5 + $0x120] ss:$8 sps:$4 sm:$0xff]   ;;  %v4435_v25 = vld [vmem:[%s5214_s10 + $0x90] ss:$36 sps:$4 sm:$0xff]   ;;  %v4442_v26 = vld [vmem:[#allocation5 + $0x344] ss:$8 sps:$4 sm:$0xff]  }
  0xa7   : > { %2463 = vmatpush1.bf16.msra.mxu0 %v4352_v31  ;;  %2078 = vmatprep.subr.bf16.mxu1 %v4353_v32  ;;  %v4439_v28 = vld [vmem:[%s5214_s10 + $0xa0] ss:$36 sps:$4 sm:$0xff]   ;;  %v4445_v30 = vld [vmem:[#allocation5 + $0x354] ss:$8 sps:$4 sm:$0xff]   ;;  %v4448_v32 = vld [vmem:[%s5214_s10 + $0xec] ss:$36 sps:$4 sm:$0xff]  }
  0xa8   : > { %2464 = vmatprep.subr.bf16.mxu0 %v4355_v33  ;;  %v4440_v29 = vld [vmem:[#allocation5 + $0x340] ss:$8 sps:$4 sm:$0xff]   ;;  %v4468_v33 = vld [vmem:[#allocation5 + $0x144] ss:$8 sps:$4 sm:$0xff]   ;;  %v4469_v49 = vld [vmem:[%s5214_s10 + $0x130] ss:$36 sps:$4 sm:$0xff]  }
  0xa9   : > { %v4446_v31 = vld [vmem:[%s5214_s10 + $0xdc] ss:$36 sps:$4 sm:$0xff]   ;;  %s3553_s23 = sshll.u32 %s5210_s14, 8  ;;  %s3913_s27 = sshll.u32 %s4957_s18, 12 }
  0xaa   : > { %2079 = vmatpush1.bf16.msra.mxu1 %v4357_v34  ;;  %v4466_v34 = vld [vmem:[#allocation5 + $0x140] ss:$8 sps:$4 sm:$0xff]   ;;  %s5457_s25 = scalar_lea.vmem [#allocation10], %s3553_s23  ;;  %s5640_s22 = scalar_lea.hbm %s5696_s4, %s3913_s27 }
  0xab   : > { %2465 = vmatpush1.bf16.msra.mxu0 %v4358_v35  ;;  %2080 = vmatprep.subr.bf16.mxu1 %v4359_v36  ;;  %v4443_v35 = vld [vmem:[#allocation5 + $0x350] ss:$8 sps:$4 sm:$0xff]   ;;  %v4483_v36 = vld [vmem:[#allocation5 + $0x154] ss:$8 sps:$4 sm:$0xff]   ;;  %v4470_v51 = vld [vmem:[#allocation5 + $0x380] ss:$8 sps:$4 sm:$0xff]  }
  0xac   : > { %2466 = vmatprep.subr.bf16.mxu0 %v4361_v37  ;;  %v4457_v37 = vld [vmem:[#allocation5 + $0x364] ss:$8 sps:$4 sm:$0xff]   ;;  %s3420_s9 = sshll.u32 %s5457_s25, 4  ;;  %s3404_s18 = scalar_lea.sflag [#allocation4], %s5210_s14  ;;  %s5642_s9 = int_to_ptr.vmem [resolvable:$true] %s3420_s9 }
  0xad   : > { %s4875_s26 = scalar_lea.vmem %s5642_s9, 4096  ;;  %s4976_s8 = smov [#allocation10]  }
  0xae   : > { %2081 = vmatpush1.bf16.msra.mxu1 %v4363_v38  ;;  %v4450_v38 = vld [vmem:[%s5214_s10 + $0xd8] ss:$36 sps:$4 sm:$0xff]   ;;  %p4876_p12 = scmp.ne.s32.totalorder %s5642_s9, %s4875_s26  ;;  %s4879_s11 = sshll.u32 %s4976_s8, 4  ;;  %s4880_s11 = int_to_ptr.vmem [resolvable:$false] %s4879_s11 }
  0xaf   : > { %2467 = vmatpush1.bf16.msra.mxu0 %v4364_v39  ;;  %2082 = vmatprep.subr.bf16.mxu1 %v4365_v40  ;;  %v4454_v39 = vld [vmem:[%s5214_s10 + $0xe8] ss:$36 sps:$4 sm:$0xff]   ;;  %s4881_s13 = scalar_lea.vmem %s4880_s11, 8192  ;;  %p4882_p5 = scmp.lt.s32.totalorder %s5642_s9, %s4880_s11 }
  0xb0   : > { %2468 = vmatprep.subr.bf16.mxu0 %v4367_v41  ;;  %v4455_v40 = vld [vmem:[#allocation5 + $0x360] ss:$8 sps:$4 sm:$0xff]   ;;  %v4460_v41 = vld [vmem:[#allocation5 + $0x374] ss:$8 sps:$4 sm:$0xff]   ;;  %p4877_p6 = pnand %p4876_p12, %p5154_p0  ;;  %p4883_p7 = scmp.lt.s32.totalorder %s4881_s13, %s4875_s26 }
  0xb2   : > { %2083 = vmatpush1.bf16.msra.mxu1 %v4369_v42  ;;  %v4461_v42 = vld [vmem:[%s5214_s10 + $0x124] ss:$36 sps:$4 sm:$0xff]   ;;  %p4878_p3 = pneg %p4877_p6  ;;  %p4884_p9 = por %p4883_p7, %p4882_p5 }
  0xb3   : > { %2469 = vmatpush1.bf16.msra.mxu0 %v4370_v43  ;;  %2084 = vmatprep.subr.bf16.mxu1 %v4371_v44  ;;  %v4463_v43 = vld [vmem:[%s5214_s10 + $0x134] ss:$36 sps:$4 sm:$0xff]  }
  0xb4   : > { %2470 = vmatprep.subr.bf16.mxu0 %v4373_v45  ;;  %v4481_v44 = vld [vmem:[#allocation5 + $0x150] ss:$8 sps:$4 sm:$0xff]   ;;  %v4498_v45 = vld [vmem:[#allocation5 + $0x164] ss:$8 sps:$4 sm:$0xff]   ;;  %p4885_p13 = pnand %p4884_p9, %p4878_p3 }
  0xb6   : > { %2085 = vmatpush1.bf16.msra.mxu1 %v4375_v46  ;;  %v4458_v46 = vld [vmem:[#allocation5 + $0x370] ss:$8 sps:$4 sm:$0xff]  }
  0xb7   : > { %2471 = vmatpush1.bf16.msra.mxu0 %v4376_v47  ;;  %2086 = vmatprep.subr.bf16.mxu1 %v4377_v48  ;;  %v4465_v47 = vld [vmem:[%s5214_s10 + $0x120] ss:$36 sps:$4 sm:$0xff]  }
  0xb8   : > { %2472 = vmatprep.subr.bf16.mxu0 %v4379_v50  ;;  %v4472_v48 = vld [vmem:[#allocation5 + $0x384] ss:$8 sps:$4 sm:$0xff]   ;;  %v4496_v50 = vld [vmem:[#allocation5 + $0x160] ss:$8 sps:$4 sm:$0xff]  }
  0xba   : > { %2087 = vmatpush1.bf16.msra.mxu1 %v4381_v52  ;;  %v4475_v52 = vld [vmem:[#allocation5 + $0x394] ss:$8 sps:$4 sm:$0xff]  }
  0xbb   : > { %2473 = vmatpush1.bf16.msra.mxu0 %v4382_v53  ;;  %2088 = vmatprep.subr.bf16.mxu1 %v4383_v54  ;;  %v4476_v53 = vld [vmem:[%s5214_s10 + $0x16c] ss:$36 sps:$4 sm:$0xff]   ;;  %v4478_v54 = vld [vmem:[%s5214_s10 + $0x17c] ss:$36 sps:$4 sm:$0xff]  }
  0xbc   : > { %2474 = vmatprep.subr.bf16.mxu0 %v4385_v55  ;;  %v4513_v55 = vld [vmem:[#allocation5 + $0x174] ss:$8 sps:$4 sm:$0xff]  }
  0xbe   : > { %2089 = vmatpush1.bf16.msra.mxu1 %v4387_v56  ;;  %v4473_v56 = vld [vmem:[#allocation5 + $0x390] ss:$8 sps:$4 sm:$0xff]  }
  0xbf   : > { %2475 = vmatpush1.bf16.msra.mxu0 %v4388_v57  ;;  %2090 = vmatprep.subr.bf16.mxu1 %v4389_v58  ;;  %v4511_v57 = vld [vmem:[#allocation5 + $0x170] ss:$8 sps:$4 sm:$0xff]   ;;  %v4529_v58 = vld [vmem:[#allocation5 + $0x184] ss:$8 sps:$4 sm:$0xff]  }
  0xc0   : > { %2476 = vmatprep.subr.bf16.mxu0 %v4391_v59  ;;  %v4487_v59 = vld [vmem:[#allocation5 + $0x3a4] ss:$8 sps:$4 sm:$0xff]  }
  0xc2   : > { %2091 = vmatpush1.bf16.msra.mxu1 %v4393_v60  ;;  %v4480_v60 = vld [vmem:[%s5214_s10 + $0x168] ss:$36 sps:$4 sm:$0xff]  }
  0xc3   : > { %2477 = vmatpush1.bf16.msra.mxu0 %v4394_v61  ;;  %2092 = vmatprep.subr.bf16.mxu1 %v4395_v62  ;;  %v4484_v61 = vld [vmem:[%s5214_s10 + $0x178] ss:$36 sps:$4 sm:$0xff]   ;;  %v4485_v62 = vld [vmem:[#allocation5 + $0x3a0] ss:$8 sps:$4 sm:$0xff]  }
  0xc4   : > { %2478 = vmatprep.subr.bf16.mxu0 %v4397_v63  ;;  %v4490_v63 = vld [vmem:[#allocation5 + $0x3b4] ss:$8 sps:$4 sm:$0xff]  }
  0xc6   : > { %2093 = vmatpush1.bf16.msra.mxu1 %v4399_v0  ;;  %v4491_v0 = vld [vmem:[%s5214_s10 + $0x1b4] ss:$36 sps:$4 sm:$0xff]  }
  0xc7   : > { %2479 = vmatpush1.bf16.msra.mxu0 %v4400_v1  ;;  %2255 = vmatprep.subr.bf16.mxu1 %v4409_v2  ;;  %v4493_v1 = vld [vmem:[%s5214_s10 + $0x1c4] ss:$36 sps:$4 sm:$0xff]  }
  0xc8   : > { %2641 = vmatprep.subr.bf16.mxu0 %v4412_v3  ;;  %v4527_v2 = vld [vmem:[#allocation5 + $0x180] ss:$8 sps:$4 sm:$0xff]   ;;  %v4540_v3 = vld [vmem:[#allocation5 + $0x194] ss:$8 sps:$4 sm:$0xff]  }
  0xc9   : > { %2095 = vmatmul.mubr.bf16.vlgmr.msra.gmra.mrb[0].mxu1 %v4401_v4  ;;  %v4488_v4 = vld [vmem:[#allocation5 + $0x3b0] ss:$8 sps:$4 sm:$0xff]  }
  0xca   : > { %2481 = vmatmul.mubr.bf16.vlgmr.msra.gmra.mrb[0].mxu0 %v4404_v5  ;;  %2256 = vmatpush1.bf16.msra.mxu1 %v4407_v6  ;;  %v4495_v5 = vld [vmem:[%s5214_s10 + $0x1b0] ss:$36 sps:$4 sm:$0xff]   ;;  %v4502_v6 = vld [vmem:[#allocation5 + $0x3c4] ss:$8 sps:$4 sm:$0xff]  }
  0xcb   : > { %2642 = vmatpush1.bf16.msra.mxu0 %v4410_v7  ;;  %2104 = vmatprep.mubr.bf16.mxu1 %v4416_v9  ;;  %v4499_v7 = vld [vmem:[%s5214_s10 + $0x1c0] ss:$36 sps:$4 sm:$0xff]  }
  0xcc   : > { %2643 = vmatprep.subr.bf16.mxu0 %v4415_v8  ;;  %2490 = vmatprep.mubr.bf16.mxu0 %v4418_v10  ;;  %v4538_v8 = vld [vmem:[#allocation5 + $0x190] ss:$8 sps:$4 sm:$0xff]   ;;  %v4500_v9 = vld [vmem:[#allocation5 + $0x3c0] ss:$8 sps:$4 sm:$0xff]   ;;  %v4505_v10 = vld [vmem:[#allocation5 + $0x3d4] ss:$8 sps:$4 sm:$0xff]  }
  0xcd   : > { %2257 = vmatprep.subr.bf16.mxu1 %v4423_v11  ;;  %v4506_v11 = vld [vmem:[%s5214_s10 + $0x1fc] ss:$36 sps:$4 sm:$0xff]  }
  0xce   : > { %2258 = vmatpush1.bf16.msra.mxu1 %v4421_v13  ;;  %v4549_v13 = vld [vmem:[#allocation5 + $0x1a4] ss:$8 sps:$4 sm:$0xff]  }
  0xcf   : > { %2644 = vmatpush1.bf16.msra.mxu0 %v4413_v12  ;;  %2259 = vmatprep.subr.bf16.mxu1 %v4438_v15  ;;  %v4508_v12 = vld [vmem:[%s5214_s10 + $0x20c] ss:$36 sps:$4 sm:$0xff]  }
  0xd0   : > { %2645 = vmatprep.subr.bf16.mxu0 %v4427_v14  ;;  %v4547_v14 = vld [vmem:[#allocation5 + $0x1a0] ss:$8 sps:$4 sm:$0xff]   ;;  %v4503_v15 = vld [vmem:[#allocation5 + $0x3d0] ss:$8 sps:$4 sm:$0xff]  }
  0xd1   : > { %2105 = vmatmul.mubr.bf16.gmra.mrb[4].mxu1 %v4420_v16  ;;  %v4561_v16 = vld [vmem:[#allocation5 + $0x1b4] ss:$8 sps:$4 sm:$0xff]  }
  0xd2   : > { %2491 = vmatmul.mubr.bf16.gmra.mrb[4].mxu0 %v4424_v17  ;;  %2114 = vmatprep.mubr.bf16.mxu1 %v4431_v20  ;;  %v4517_v17 = vld [vmem:[#allocation5 + $0x3e4] ss:$8 sps:$4 sm:$0xff]   ;;  %v4515_v20 = vld [vmem:[#allocation5 + $0x3e0] ss:$8 sps:$4 sm:$0xff]  }
  0xd3   : > { %2646 = vmatpush1.bf16.msra.mxu0 %v4425_v18  ;;  %2500 = vmatprep.mubr.bf16.mxu0 %v4433_v21  ;;  %v4510_v18 = vld [vmem:[%s5214_s10 + $0x1f8] ss:$36 sps:$4 sm:$0xff]  }
  0xd4   : > { %2647 = vmatprep.subr.bf16.mxu0 %v4430_v19  ;;  %2260 = vmatpush1.bf16.msra.mxu1 %v4436_v22  ;;  %v4514_v19 = vld [vmem:[%s5214_s10 + $0x208] ss:$36 sps:$4 sm:$0xff]   ;;  %v4520_v21 = vld [vmem:[#allocation5 + $0x3f4] ss:$8 sps:$4 sm:$0xff]  }
  0xd5   : > { %2261 = vmatprep.subr.bf16.mxu1 %v4453_v23  ;;  %v4521_v22 = vld [vmem:[%s5214_s10 + $0x244] ss:$36 sps:$4 sm:$0xff]   ;;  %v4525_v23 = vld [vmem:[%s5214_s10 + $0x1c] ss:$36 sps:$4 sm:$0xff]  }
  0xd7   : > { %2648 = vmatpush1.bf16.msra.mxu0 %v4428_v24  ;;  %v4559_v24 = vld [vmem:[#allocation5 + $0x1b0] ss:$8 sps:$4 sm:$0xff]  }
  0xd8   : > { %2649 = vmatprep.subr.bf16.mxu0 %v4442_v26  ;;  %2262 = vmatpush1.bf16.msra.mxu1 %v4451_v27  ;;  %v4518_v26 = vld [vmem:[#allocation5 + $0x3f0] ss:$8 sps:$4 sm:$0xff]  }
  0xd9   : > { %2115 = vmatmul.mubr.bf16.gmra.mrb[8].mxu1 %v4435_v25  ;;  %2263 = vmatprep.subr.bf16.mxu1 %v4468_v33  ;;  %v4570_v25 = vld [vmem:[#allocation5 + $0x1c4] ss:$8 sps:$4 sm:$0xff]   ;;  %v4523_v27 = vld [vmem:[%s5214_s10 + $0x18] ss:$36 sps:$4 sm:$0xff]  }
  0xda   : > { %2501 = vmatmul.mubr.bf16.gmra.mrb[8].mxu0 %v4439_v28  ;;  %2124 = vmatprep.mubr.bf16.mxu1 %v4446_v31  ;;  %v4532_v28 = vld [vmem:[#allocation5 + $0x404] ss:$8 sps:$4 sm:$0xff]   ;;  %v4530_v31 = vld [vmem:[#allocation5 + $0x400] ss:$8 sps:$4 sm:$0xff]  }
  0xdb   : > { %2650 = vmatpush1.bf16.msra.mxu0 %v4440_v29  ;;  %2510 = vmatprep.mubr.bf16.mxu0 %v4448_v32  ;;  %v4568_v29 = vld [vmem:[#allocation5 + $0x1c0] ss:$8 sps:$4 sm:$0xff]   ;;  %v4533_v32 = vld [vmem:[%s5214_s10 + $0x28c] ss:$36 sps:$4 sm:$0xff]  }
  0xdc   : > { %2651 = vmatprep.subr.bf16.mxu0 %v4445_v30  ;;  %2264 = vmatpush1.bf16.msra.mxu1 %v4466_v34  ;;  %v4526_v30 = vld [vmem:[%s5214_s10 + $0x240] ss:$36 sps:$4 sm:$0xff]   ;;  %v4553_v34 = vld [vmem:[#allocation5 + $0x414] ss:$8 sps:$4 sm:$0xff]  }
  0xdd   : > { %2265 = vmatprep.subr.bf16.mxu1 %v4483_v36  ;;  %v4535_v33 = vld [vmem:[%s5214_s10 + $0x64] ss:$36 sps:$4 sm:$0xff]   ;;  %v4580_v36 = vld [vmem:[#allocation5 + $0x1d0] ss:$8 sps:$4 sm:$0xff]  }
  0xdf   : > { %2652 = vmatpush1.bf16.msra.mxu0 %v4443_v35  ;;  %v4582_v35 = vld [vmem:[#allocation5 + $0x1d4] ss:$8 sps:$4 sm:$0xff]  }
  0xe0   : > { %2653 = vmatprep.subr.bf16.mxu0 %v4457_v37  ;;  %2266 = vmatpush1.bf16.msra.mxu1 %v4481_v44  ;;  %v4551_v37 = vld [vmem:[#allocation5 + $0x410] ss:$8 sps:$4 sm:$0xff]   ;;  %v4572_v44 = vld [vmem:[#allocation5 + $0x420] ss:$8 sps:$4 sm:$0xff]  }
  0xe1   : > { %2125 = vmatmul.mubr.bf16.gmra.mrb[12].mxu1 %v4450_v38  ;;  %2267 = vmatprep.subr.bf16.mxu1 %v4498_v45  ;;  %v4591_v38 = vld [vmem:[#allocation5 + $0x1e4] ss:$8 sps:$4 sm:$0xff]   ;;  %v4589_v45 = vld [vmem:[#allocation5 + $0x1e0] ss:$8 sps:$4 sm:$0xff]  }
  0xe2   : > { %2511 = vmatmul.mubr.bf16.gmra.mrb[12].mxu0 %v4454_v39  ;;  %2134 = vmatprep.mubr.bf16.mxu1 %v4461_v42  ;;  %v4537_v39 = vld [vmem:[%s5214_s10 + $0x288] ss:$36 sps:$4 sm:$0xff]   ;;  %v4542_v42 = vld [vmem:[%s5214_s10 + $0x2d4] ss:$36 sps:$4 sm:$0xff]  }
  0xe3   : > { %2654 = vmatpush1.bf16.msra.mxu0 %v4455_v40  ;;  %2520 = vmatprep.mubr.bf16.mxu0 %v4463_v43  ;;  %v4574_v40 = vld [vmem:[#allocation5 + $0x424] ss:$8 sps:$4 sm:$0xff]  }
  0xe4   : > { %2655 = vmatprep.subr.bf16.mxu0 %v4460_v41  ;;  %2268 = vmatpush1.bf16.msra.mxu1 %v4496_v50  ;;  %v4541_v41 = vld [vmem:[%s5214_s10 + $0x60] ss:$36 sps:$4 sm:$0xff]   ;;  %v4544_v43 = vld [vmem:[%s5214_s10 + $0xac] ss:$36 sps:$4 sm:$0xff]  }
  0xe5   : > { %2269 = vmatprep.subr.bf16.mxu1 %v4513_v55  ;;  %v4546_v50 = vld [vmem:[%s5214_s10 + $0x2d0] ss:$36 sps:$4 sm:$0xff]   ;;  %v4611_v55 = vld [vmem:[#allocation5 + $0x440] ss:$8 sps:$4 sm:$0xff]  }
  0xe7   : > { %2656 = vmatpush1.bf16.msra.mxu0 %v4458_v46  ;;  %v4595_v46 = vld [vmem:[#allocation5 + $0x434] ss:$8 sps:$4 sm:$0xff]  }
  0xe8   : > { %2657 = vmatprep.subr.bf16.mxu0 %v4472_v48  ;;  %2270 = vmatpush1.bf16.msra.mxu1 %v4511_v57  ;;  %v4593_v48 = vld [vmem:[#allocation5 + $0x430] ss:$8 sps:$4 sm:$0xff]   ;;  %v4628_v57 = vld [vmem:[#allocation5 + $0x454] ss:$8 sps:$4 sm:$0xff]  }
  0xe9   : > { %2135 = vmatmul.mubr.bf16.gmra.mrb[16].mxu1 %v4465_v47  ;;  %2271 = vmatprep.subr.bf16.mxu1 %v4529_v58  ;;  %v4603_v47 = vld [vmem:[#allocation5 + $0x1f4] ss:$8 sps:$4 sm:$0xff]   ;;  %v4626_v58 = vld [vmem:[#allocation5 + $0x450] ss:$8 sps:$4 sm:$0xff]  }
  0xea   : > { %2521 = vmatmul.mubr.bf16.gmra.mrb[16].mxu0 %v4469_v49  ;;  %2144 = vmatprep.mubr.bf16.mxu1 %v4476_v53  ;;  %v4601_v49 = vld [vmem:[#allocation5 + $0x1f0] ss:$8 sps:$4 sm:$0xff]   ;;  %v4554_v53 = vld [vmem:[%s5214_s10 + $0x31c] ss:$36 sps:$4 sm:$0xff]  }
  0xeb   : > { %2658 = vmatpush1.bf16.msra.mxu0 %v4470_v51  ;;  %2530 = vmatprep.mubr.bf16.mxu0 %v4478_v54  ;;  %v4613_v51 = vld [vmem:[#allocation5 + $0x444] ss:$8 sps:$4 sm:$0xff]   ;;  %v4556_v54 = vld [vmem:[%s5214_s10 + $0xf4] ss:$36 sps:$4 sm:$0xff]  }
  0xec   : > { %2659 = vmatprep.subr.bf16.mxu0 %v4475_v52  ;;  %2272 = vmatpush1.bf16.msra.mxu1 %v4527_v2  ;;  %v4550_v52 = vld [vmem:[%s5214_s10 + $0xa8] ss:$36 sps:$4 sm:$0xff]   ;;  %v4658_v2 = vld [vmem:[#allocation5 + $0x474] ss:$8 sps:$4 sm:$0xff]  }
  0xed   : > { %2273 = vmatprep.subr.bf16.mxu1 %v4540_v3  ;;  %v4567_v3 = vld [vmem:[%s5214_s10 + $0x360] ss:$36 sps:$4 sm:$0xff]  }
  0xef   : > { %2660 = vmatpush1.bf16.msra.mxu0 %v4473_v56  ;;  %v4729_v56 = vld [vmem:[#allocation5 + $0x204] ss:$8 sps:$4 sm:$0xff]  }
  0xf0   : > { %2661 = vmatprep.subr.bf16.mxu0 %v4487_v59  ;;  %2274 = vmatpush1.bf16.msra.mxu1 %v4538_v8  ;;  %v4558_v59 = vld [vmem:[%s5214_s10 + $0x318] ss:$36 sps:$4 sm:$0xff]   ;;  %v4583_v8 = vld [vmem:[%s5214_s10 + $0x180] ss:$36 sps:$4 sm:$0xff]  }
  0xf1   : > { %2145 = vmatmul.mubr.bf16.gmra.mrb[20].mxu1 %v4480_v60  ;;  %2275 = vmatprep.subr.bf16.mxu1 %v4549_v13  ;;  %v4643_v60 = vld [vmem:[#allocation5 + $0x464] ss:$8 sps:$4 sm:$0xff]   ;;  %v4596_v13 = vld [vmem:[%s5214_s10 + $0x43c] ss:$36 sps:$4 sm:$0xff]  }
  0xf2   : > { %2531 = vmatmul.mubr.bf16.gmra.mrb[20].mxu0 %v4484_v61  ;;  %2154 = vmatprep.mubr.bf16.mxu1 %v4491_v0  ;;  %v4562_v61 = vld [vmem:[%s5214_s10 + $0xf0] ss:$36 sps:$4 sm:$0xff]   ;;  %v4641_v0 = vld [vmem:[#allocation5 + $0x460] ss:$8 sps:$4 sm:$0xff]  }
  0xf3   : > { %2662 = vmatpush1.bf16.msra.mxu0 %v4485_v62  ;;  %2540 = vmatprep.mubr.bf16.mxu0 %v4493_v1  ;;  %v4563_v62 = vld [vmem:[%s5214_s10 + $0x364] ss:$36 sps:$4 sm:$0xff]   ;;  %v4656_v1 = vld [vmem:[#allocation5 + $0x470] ss:$8 sps:$4 sm:$0xff]  }
  0xf4   : > { %2663 = vmatprep.subr.bf16.mxu0 %v4490_v63  ;;  %2276 = vmatpush1.bf16.msra.mxu1 %v4547_v14  ;;  %v4565_v63 = vld [vmem:[%s5214_s10 + $0x13c] ss:$36 sps:$4 sm:$0xff]   ;;  %v4598_v14 = vld [vmem:[%s5214_s10 + $0x214] ss:$36 sps:$4 sm:$0xff]  }
  0xf5   : > { %2277 = vmatprep.subr.bf16.mxu1 %v4561_v16  ;;  %v4604_v16 = vld [vmem:[%s5214_s10 + $0x210] ss:$36 sps:$4 sm:$0xff]  }
  0xf7   : > { %2664 = vmatpush1.bf16.msra.mxu0 %v4488_v4  ;;  %v4571_v4 = vld [vmem:[%s5214_s10 + $0x138] ss:$36 sps:$4 sm:$0xff]  }
  0xf8   : > { %2665 = vmatprep.subr.bf16.mxu0 %v4502_v6  ;;  %2278 = vmatpush1.bf16.msra.mxu1 %v4559_v24  ;;  %v4577_v6 = vld [vmem:[%s5214_s10 + $0x184] ss:$36 sps:$4 sm:$0xff]   ;;  %v4731_v24 = vld [vmem:[#allocation5 + $0x214] ss:$8 sps:$4 sm:$0xff]  }
  0xf9   : > { %2155 = vmatmul.mubr.bf16.gmra.mrb[24].mxu1 %v4495_v5  ;;  %2279 = vmatprep.subr.bf16.mxu1 %v4570_v25  ;;  %v4575_v5 = vld [vmem:[%s5214_s10 + $0x3ac] ss:$36 sps:$4 sm:$0xff]  }
  0xfa   : > { %2541 = vmatmul.mubr.bf16.gmra.mrb[24].mxu0 %v4499_v7  ;;  %2164 = vmatprep.mubr.bf16.mxu1 %v4506_v11  ;;  %v4579_v7 = vld [vmem:[%s5214_s10 + $0x3a8] ss:$36 sps:$4 sm:$0xff]   ;;  %v4588_v11 = vld [vmem:[%s5214_s10 + $0x3f0] ss:$36 sps:$4 sm:$0xff]  }
  0xfb   : > { %2666 = vmatpush1.bf16.msra.mxu0 %v4500_v9  ;;  %2550 = vmatprep.mubr.bf16.mxu0 %v4508_v12  ;;  %v4584_v9 = vld [vmem:[%s5214_s10 + $0x3f4] ss:$36 sps:$4 sm:$0xff]   ;;  %v4592_v12 = vld [vmem:[%s5214_s10 + $0x1c8] ss:$36 sps:$4 sm:$0xff]  }
  0xfc   : > { %2667 = vmatprep.subr.bf16.mxu0 %v4505_v10  ;;  %2280 = vmatpush1.bf16.msra.mxu1 %v4568_v29  ;;  %v4586_v10 = vld [vmem:[%s5214_s10 + $0x1cc] ss:$36 sps:$4 sm:$0xff]  }
  0xfd   : > { %2281 = vmatprep.subr.bf16.mxu1 %v4582_v35  ;;  %v4618_v25 = vld [vmem:[%s5214_s10 + $0x50] ss:$36 sps:$4 sm:$0xff]   ;;  %v4629_v35 = vld [vmem:[%s5214_s10 + $0xe4] ss:$36 sps:$4 sm:$0xff]  }
  0xfe   : > { %v4622_v29 = vld [vmem:[%s5214_s10 + $0x2ec] ss:$36 sps:$4 sm:$0xff]  }
  0xff   : > { %2668 = vmatpush1.bf16.msra.mxu0 %v4503_v15  ;;  %v4600_v15 = vld [vmem:[%s5214_s10 + $0x438] ss:$36 sps:$4 sm:$0xff]  }
 0x100   : > { %2669 = vmatprep.subr.bf16.mxu0 %v4517_v17  ;;  %2282 = vmatpush1.bf16.msra.mxu1 %v4580_v36  ;;  %v4607_v17 = vld [vmem:[%s5214_s10 + $0xc] ss:$36 sps:$4 sm:$0xff]   ;;  %v4631_v36 = vld [vmem:[%s5214_s10 + $0x334] ss:$36 sps:$4 sm:$0xff]  }
 0x101   : > { %2165 = vmatmul.mubr.bf16.gmra.mrb[28].mxu1 %v4510_v18  ;;  %2283 = vmatprep.subr.bf16.mxu1 %v4591_v38  ;;  %v4608_v18 = vld [vmem:[%s5214_s10 + $0x25c] ss:$36 sps:$4 sm:$0xff]   ;;  %v4737_v38 = vld [vmem:[#allocation5 + $0x244] ss:$8 sps:$4 sm:$0xff]  }
 0x102   : > { %2551 = vmatmul.mubr.bf16.gmra.mrb[28].mxu0 %v4514_v19  ;;  %2174 = vmatprep.mubr.bf16.mxu1 %v4521_v22  ;;  %v4605_v19 = vld [vmem:[%s5214_s10 + $0x8] ss:$36 sps:$4 sm:$0xff]  }
 0x103   : > { %2670 = vmatpush1.bf16.msra.mxu0 %v4515_v20  ;;  %2673 = vmatprep.mubr.bf16.mxu0 %v4525_v23  ;;  %v4610_v20 = vld [vmem:[%s5214_s10 + $0x258] ss:$36 sps:$4 sm:$0xff]   ;;  %v4616_v22 = vld [vmem:[%s5214_s10 + $0x2a4] ss:$36 sps:$4 sm:$0xff]  }
 0x104   : > { %2671 = vmatprep.subr.bf16.mxu0 %v4520_v21  ;;  %2284 = vmatpush1.bf16.msra.mxu1 %v4589_v45  ;;  %v4614_v21 = vld [vmem:[%s5214_s10 + $0x54] ss:$36 sps:$4 sm:$0xff]   ;;  %v4730_v23 = vld [vmem:[#allocation5 + $0x200] ss:$8 sps:$4 sm:$0xff]  }
 0x105   : > { %2285 = vmatprep.subr.bf16.mxu1 %v4603_v47  ;;  %v4740_v45 = vld [vmem:[#allocation5 + $0x250] ss:$8 sps:$4 sm:$0xff]   ;;  %v4742_v47 = vld [vmem:[#allocation5 + $0x260] ss:$8 sps:$4 sm:$0xff]  }
 0x107   : > { %2672 = vmatpush1.bf16.msra.mxu0 %v4518_v26  ;;  %v4619_v26 = vld [vmem:[%s5214_s10 + $0x2a0] ss:$36 sps:$4 sm:$0xff]  }
 0x108   : > { %2834 = vmatprep.subr.bf16.mxu0 %v4532_v28  ;;  %2286 = vmatpush1.bf16.msra.mxu1 %v4601_v49  ;;  %v4620_v28 = vld [vmem:[%s5214_s10 + $0x9c] ss:$36 sps:$4 sm:$0xff]   ;;  %v4639_v49 = vld [vmem:[%s5214_s10 + $0x128] ss:$36 sps:$4 sm:$0xff]  }
 0x109   : > { %2175 = vmatmul.mubr.bf16.gmra.mrb[32].mxu1 %v4526_v30  ;;  %3914 = vmatprep.subr.bf16.mxu1 %v4729_v56  ;;  %v4733_v30 = vld [vmem:[#allocation5 + $0x224] ss:$8 sps:$4 sm:$0xff]   ;;  %v4747_v56 = vld [vmem:[#allocation5 + $0x294] ss:$8 sps:$4 sm:$0xff]  }
 0x10a   : > { %2674 = vmatmul.mubr.bf16.vlgmr.msra.gmra.mrb[0].mxu0 %v4523_v27  ;;  %2184 = vmatprep.mubr.bf16.mxu1 %v4533_v32  ;;  %v4732_v27 = vld [vmem:[#allocation5 + $0x210] ss:$8 sps:$4 sm:$0xff]   ;;  %v4735_v32 = vld [vmem:[#allocation5 + $0x234] ss:$8 sps:$4 sm:$0xff]  }
 0x10b   : > { %2835 = vmatpush1.bf16.msra.mxu0 %v4530_v31  ;;  %2683 = vmatprep.mubr.bf16.mxu0 %v4535_v33  ;;  %v4734_v31 = vld [vmem:[#allocation5 + $0x220] ss:$8 sps:$4 sm:$0xff]   ;;  %v4624_v33 = vld [vmem:[%s5214_s10 + $0x98] ss:$36 sps:$4 sm:$0xff]  }
 0x10c   : > { %2836 = vmatprep.subr.bf16.mxu0 %v4553_v34  ;;  %v4625_v34 = vld [vmem:[%s5214_s10 + $0x2e8] ss:$36 sps:$4 sm:$0xff]  }
 0x10f   : > { %2837 = vmatpush1.bf16.msra.mxu0 %v4551_v37  ;;  %v4736_v37 = vld [vmem:[#allocation5 + $0x230] ss:$8 sps:$4 sm:$0xff]  }
 0x110   : > { %2838 = vmatprep.subr.bf16.mxu0 %v4574_v40  ;;  %v4739_v40 = vld [vmem:[#allocation5 + $0x254] ss:$8 sps:$4 sm:$0xff]  }
 0x111   : > { %2185 = vmatmul.mubr.bf16.gmra.mrb[36].mxu1 %v4537_v39  ;;  %v4738_v39 = vld [vmem:[#allocation5 + $0x240] ss:$8 sps:$4 sm:$0xff]  }
 0x112   : > { %2684 = vmatmul.mubr.bf16.gmra.mrb[4].mxu0 %v4541_v41  ;;  %2194 = vmatprep.mubr.bf16.mxu1 %v4542_v42  ;;  %v4633_v41 = vld [vmem:[%s5214_s10 + $0xe0] ss:$36 sps:$4 sm:$0xff]   ;;  %v4634_v42 = vld [vmem:[%s5214_s10 + $0x330] ss:$36 sps:$4 sm:$0xff]  }
 0x113   : > { %2693 = vmatprep.mubr.bf16.mxu0 %v4544_v43  ;;  %2839 = vmatpush1.bf16.msra.mxu0 %v4572_v44  ;;  %v4635_v43 = vld [vmem:[%s5214_s10 + $0x12c] ss:$36 sps:$4 sm:$0xff]   ;;  %v4637_v44 = vld [vmem:[%s5214_s10 + $0x37c] ss:$36 sps:$4 sm:$0xff]  }
 0x114   : > { %2840 = vmatprep.subr.bf16.mxu0 %v4595_v46  ;;  %v4741_v46 = vld [vmem:[#allocation5 + $0x264] ss:$8 sps:$4 sm:$0xff]  }
 0x117   : > { %2841 = vmatpush1.bf16.msra.mxu0 %v4593_v48  ;;  %v4743_v48 = vld [vmem:[#allocation5 + $0x274] ss:$8 sps:$4 sm:$0xff]  }
 0x118   : > { %2842 = vmatprep.subr.bf16.mxu0 %v4613_v51  ;;  %v4644_v51 = vld [vmem:[%s5214_s10 + $0x174] ss:$36 sps:$4 sm:$0xff]  }
 0x119   : > { %2195 = vmatmul.mubr.bf16.gmra.mrb[40].mxu1 %v4546_v50  ;;  %v4640_v50 = vld [vmem:[%s5214_s10 + $0x378] ss:$36 sps:$4 sm:$0xff]  }
 0x11a   : > { %2694 = vmatmul.mubr.bf16.gmra.mrb[8].mxu0 %v4550_v52  ;;  %2204 = vmatprep.mubr.bf16.mxu1 %v4554_v53  ;;  %v4646_v52 = vld [vmem:[%s5214_s10 + $0x3c4] ss:$36 sps:$4 sm:$0xff]   ;;  %v4744_v53 = vld [vmem:[#allocation5 + $0x270] ss:$8 sps:$4 sm:$0xff]  }
 0x11b   : > { %2703 = vmatprep.mubr.bf16.mxu0 %v4556_v54  ;;  %2843 = vmatpush1.bf16.msra.mxu0 %v4611_v55  ;;  %v4745_v54 = vld [vmem:[#allocation5 + $0x284] ss:$8 sps:$4 sm:$0xff]   ;;  %v4746_v55 = vld [vmem:[#allocation5 + $0x280] ss:$8 sps:$4 sm:$0xff]  }
 0x11c   : > { %2844 = vmatprep.subr.bf16.mxu0 %v4628_v57  ;;  %v4648_v57 = vld [vmem:[%s5214_s10 + $0x170] ss:$36 sps:$4 sm:$0xff]  }
 0x11f   : > { %2845 = vmatpush1.bf16.msra.mxu0 %v4626_v58  ;;  %v4649_v58 = vld [vmem:[%s5214_s10 + $0x3c0] ss:$36 sps:$4 sm:$0xff]  }
 0x120   : > { %2846 = vmatprep.subr.bf16.mxu0 %v4643_v60  ;;  %v4652_v60 = vld [vmem:[%s5214_s10 + $0x40c] ss:$36 sps:$4 sm:$0xff]  }
 0x121   : > { %2205 = vmatmul.mubr.bf16.gmra.mrb[44].mxu1 %v4558_v59  ;;  %v4650_v59 = vld [vmem:[%s5214_s10 + $0x1bc] ss:$36 sps:$4 sm:$0xff]  }
 0x122   : > { %2704 = vmatmul.mubr.bf16.gmra.mrb[12].mxu0 %v4562_v61  ;;  %2214 = vmatprep.mubr.bf16.mxu1 %v4563_v62  ;;  %v4748_v61 = vld [vmem:[#allocation5 + $0x290] ss:$8 sps:$4 sm:$0xff]   ;;  %v4749_v62 = vld [vmem:[#allocation5 + $0x2a4] ss:$8 sps:$4 sm:$0xff]  }
 0x123   : > { %2713 = vmatprep.mubr.bf16.mxu0 %v4565_v63  ;;  %2847 = vmatpush1.bf16.msra.mxu0 %v4641_v0  ;;  %v4750_v63 = vld [vmem:[#allocation5 + $0x2a0] ss:$8 sps:$4 sm:$0xff]   ;;  %v4751_v0 = vld [vmem:[#allocation5 + $0x2b4] ss:$8 sps:$4 sm:$0xff]  }
 0x124   : > { %2848 = vmatprep.subr.bf16.mxu0 %v4658_v2  ;;  %v4655_v2 = vld [vmem:[%s5214_s10 + $0x408] ss:$36 sps:$4 sm:$0xff]  }
 0x127   : > { %2849 = vmatpush1.bf16.msra.mxu0 %v4656_v1  ;;  %v4654_v1 = vld [vmem:[%s5214_s10 + $0x1b8] ss:$36 sps:$4 sm:$0xff]  }
 0x129   : > { %2215 = vmatmul.mubr.bf16.gmra.mrb[48].mxu1 %v4567_v3  ;;  %v4659_v3 = vld [vmem:[%s5214_s10 + $0x204] ss:$36 sps:$4 sm:$0xff]  }
 0x12a   : > { %2714 = vmatmul.mubr.bf16.gmra.mrb[16].mxu0 %v4571_v4  ;;  %2224 = vmatprep.mubr.bf16.mxu1 %v4575_v5  ;;  %v4661_v4 = vld [vmem:[%s5214_s10 + $0x454] ss:$36 sps:$4 sm:$0xff]  }
 0x12b   : > { %2723 = vmatprep.mubr.bf16.mxu0 %v4577_v6  ;;  %v4752_v5 = vld [vmem:[#allocation5 + $0x2b0] ss:$8 sps:$4 sm:$0xff]   ;;  %v4753_v6 = vld [vmem:[#allocation5 + $0x2c4] ss:$8 sps:$4 sm:$0xff]  }
 0x131   : > { %2225 = vmatmul.mubr.bf16.gmra.mrb[52].mxu1 %v4579_v7  ;;  %v4754_v7 = vld [vmem:[#allocation5 + $0x2c0] ss:$8 sps:$4 sm:$0xff]  }
 0x132   : > { %2724 = vmatmul.mubr.bf16.gmra.mrb[20].mxu0 %v4583_v8  ;;  %2234 = vmatprep.mubr.bf16.mxu1 %v4584_v9  ;;  %v4755_v8 = vld [vmem:[#allocation5 + $0x2d4] ss:$8 sps:$4 sm:$0xff]   ;;  %v4663_v9 = vld [vmem:[%s5214_s10 + $0x200] ss:$36 sps:$4 sm:$0xff]  }
 0x133   : > { %2733 = vmatprep.mubr.bf16.mxu0 %v4586_v10  ;;  %v4664_v10 = vld [vmem:[%s5214_s10 + $0x450] ss:$36 sps:$4 sm:$0xff]  }
 0x139   : > { %2235 = vmatmul.mubr.bf16.gmra.mrb[56].mxu1 %v4588_v11  ;;  %v4665_v11 = vld [vmem:[%s5214_s10 + $0x24c] ss:$36 sps:$4 sm:$0xff]  }
 0x13a   : > { %2734 = vmatmul.mubr.bf16.gmra.mrb[24].mxu0 %v4592_v12  ;;  %2244 = vmatprep.mubr.bf16.mxu1 %v4596_v13  ;;  %v4756_v12 = vld [vmem:[#allocation5 + $0x2d0] ss:$8 sps:$4 sm:$0xff]   ;;  %v4757_v13 = vld [vmem:[#allocation5 + $0x2e4] ss:$8 sps:$4 sm:$0xff]  }
 0x13b   : > { %2743 = vmatprep.mubr.bf16.mxu0 %v4598_v14  ;;  %v4975_v14 = vmov 0  }
 0x141   : > { %2245 = vmatmul.mubr.bf16.gmra.mrb[60].mxu1 %v4600_v15  ;;  %v4758_v15 = vld [vmem:[#allocation5 + $0x2e0] ss:$8 sps:$4 sm:$0xff]  }
 0x142   : > { %2744 = vmatmul.mubr.bf16.gmra.mrb[28].mxu0 %v4604_v16  ;;  %2287 = vmatprep.mubr.bf16.mxu1 %v4607_v17  ;;  %v4759_v16 = vld [vmem:[#allocation5 + $0x2f4] ss:$8 sps:$4 sm:$0xff]   ;;  %v4667_v17 = vld [vmem:[%s5214_s10 + $0x248] ss:$36 sps:$4 sm:$0xff]  }
 0x143   : > { %2753 = vmatprep.mubr.bf16.mxu0 %v4608_v18  ;;  %v4668_v18 = vld [vmem:[%s5214_s10 + $0x20] ss:$36 sps:$4 sm:$0xff]  }
 0x149   : > { %2288 = vmatmul.mubr.bf16.vlgmr.msra.gmra.mrb[0].mxu1 %v4605_v19  ;;  %v4669_v19 = vld [vmem:[%s5214_s10 + $0x294] ss:$36 sps:$4 sm:$0xff]  }
 0x14a   : > { %2754 = vmatmul.mubr.bf16.gmra.mrb[32].mxu0 %v4610_v20  ;;  %3930 = vmatpush1.bf16.msra.mxu1 %v4730_v23  ;;  %v4760_v20 = vld [vmem:[#allocation5 + $0x2f0] ss:$8 sps:$4 sm:$0xff]   ;;  %v4673_v23 = vld [vmem:[%s5214_s10 + $0x2dc] ss:$36 sps:$4 sm:$0xff]  }
 0x14b   : > { %2297 = vmatprep.mubr.bf16.mxu1 %v4614_v21  ;;  %2763 = vmatprep.mubr.bf16.mxu0 %v4616_v22  ;;  %v4671_v21 = vld [vmem:[%s5214_s10 + $0x290] ss:$36 sps:$4 sm:$0xff]   ;;  %v4672_v22 = vld [vmem:[%s5214_s10 + $0x68] ss:$36 sps:$4 sm:$0xff]  }
 0x14c   : > { %3915 = vmatprep.subr.bf16.mxu1 %v4731_v24  ;;  %v4675_v24 = vld [vmem:[%s5214_s10 + $0x2d8] ss:$36 sps:$4 sm:$0xff]  }
 0x14e   : > { %3931 = vmatpush1.bf16.msra.mxu1 %v4732_v27  ;;  %v4679_v27 = vld [vmem:[%s5214_s10 + $0x320] ss:$36 sps:$4 sm:$0xff]  }
 0x14f   : > { %3916 = vmatprep.subr.bf16.mxu1 %v4733_v30  ;;  %v4683_v30 = vld [vmem:[%s5214_s10 + $0x368] ss:$36 sps:$4 sm:$0xff]  }
 0x151   : > { %2298 = vmatmul.mubr.bf16.gmra.mrb[4].mxu1 %v4618_v25  ;;  %v4676_v25 = vld [vmem:[%s5214_s10 + $0xb0] ss:$36 sps:$4 sm:$0xff]  }
 0x152   : > { %2764 = vmatmul.mubr.bf16.gmra.mrb[36].mxu0 %v4619_v26  ;;  %2307 = vmatprep.mubr.bf16.mxu1 %v4620_v28  ;;  %v4677_v26 = vld [vmem:[%s5214_s10 + $0x324] ss:$36 sps:$4 sm:$0xff]   ;;  %v4680_v28 = vld [vmem:[%s5214_s10 + $0xf8] ss:$36 sps:$4 sm:$0xff]  }
 0x153   : > { %2773 = vmatprep.mubr.bf16.mxu0 %v4622_v29  ;;  %3932 = vmatpush1.bf16.msra.mxu1 %v4734_v31  ;;  %v4681_v29 = vld [vmem:[%s5214_s10 + $0x36c] ss:$36 sps:$4 sm:$0xff]   ;;  %v4684_v31 = vld [vmem:[%s5214_s10 + $0x140] ss:$36 sps:$4 sm:$0xff]  }
 0x154   : > { %3917 = vmatprep.subr.bf16.mxu1 %v4735_v32  ;;  %v4685_v32 = vld [vmem:[%s5214_s10 + $0x3b4] ss:$36 sps:$4 sm:$0xff]  }
 0x157   : > { %3933 = vmatpush1.bf16.msra.mxu1 %v4736_v37  ;;  %v4692_v37 = vld [vmem:[%s5214_s10 + $0x1d0] ss:$36 sps:$4 sm:$0xff]  }
 0x158   : > { %3918 = vmatprep.subr.bf16.mxu1 %v4737_v38  ;;  %v4693_v38 = vld [vmem:[%s5214_s10 + $0x444] ss:$36 sps:$4 sm:$0xff]  }
 0x159   : > { %2308 = vmatmul.mubr.bf16.gmra.mrb[8].mxu1 %v4624_v33  ;;  %v4687_v33 = vld [vmem:[%s5214_s10 + $0x3b0] ss:$36 sps:$4 sm:$0xff]  }
 0x15a   : > { %2774 = vmatmul.mubr.bf16.gmra.mrb[40].mxu0 %v4625_v34  ;;  %2317 = vmatprep.mubr.bf16.mxu1 %v4629_v35  ;;  %v4688_v34 = vld [vmem:[%s5214_s10 + $0x188] ss:$36 sps:$4 sm:$0xff]   ;;  %v4689_v35 = vld [vmem:[%s5214_s10 + $0x3fc] ss:$36 sps:$4 sm:$0xff]  }
 0x15b   : > { %2783 = vmatprep.mubr.bf16.mxu0 %v4631_v36  ;;  %3934 = vmatpush1.bf16.msra.mxu1 %v4738_v39  ;;  %v4691_v36 = vld [vmem:[%s5214_s10 + $0x3f8] ss:$36 sps:$4 sm:$0xff]   ;;  %v4695_v39 = vld [vmem:[%s5214_s10 + $0x440] ss:$36 sps:$4 sm:$0xff]  }
 0x15c   : > { %3919 = vmatprep.subr.bf16.mxu1 %v4739_v40  ;;  %v4696_v40 = vld [vmem:[%s5214_s10 + $0x218] ss:$36 sps:$4 sm:$0xff]  }
 0x15f   : > { %3935 = vmatpush1.bf16.msra.mxu1 %v4740_v45  ;;  %v4703_v45 = vld [vmem:[%s5214_s10 + $0x298] ss:$36 sps:$4 sm:$0xff]  }
 0x160   : > { %3920 = vmatprep.subr.bf16.mxu1 %v4741_v46  ;;  %v4704_v46 = vld [vmem:[%s5214_s10 + $0x2a8] ss:$36 sps:$4 sm:$0xff]  }
 0x161   : > { %2318 = vmatmul.mubr.bf16.gmra.mrb[12].mxu1 %v4633_v41  ;;  %v4699_v41 = vld [vmem:[%s5214_s10 + $0x254] ss:$36 sps:$4 sm:$0xff]  }
 0x162   : > { %2784 = vmatmul.mubr.bf16.gmra.mrb[44].mxu0 %v4634_v42  ;;  %2327 = vmatprep.mubr.bf16.mxu1 %v4635_v43  ;;  %v4697_v42 = vld [vmem:[%s5214_s10 + $0x250] ss:$36 sps:$4 sm:$0xff]   ;;  %v4700_v43 = vld [vmem:[%s5214_s10 + $0x260] ss:$36 sps:$4 sm:$0xff]  }
 0x163   : > { %2793 = vmatprep.mubr.bf16.mxu0 %v4637_v44  ;;  %3936 = vmatpush1.bf16.msra.mxu1 %v4742_v47  ;;  %v4701_v44 = vld [vmem:[%s5214_s10 + $0x29c] ss:$36 sps:$4 sm:$0xff]   ;;  %v4705_v47 = vld [vmem:[%s5214_s10 + $0x2e4] ss:$36 sps:$4 sm:$0xff]  }
 0x164   : > { %3921 = vmatprep.subr.bf16.mxu1 %v4743_v48  ;;  %v4707_v48 = vld [vmem:[%s5214_s10 + $0x2e0] ss:$36 sps:$4 sm:$0xff]  }
 0x167   : > { %3937 = vmatpush1.bf16.msra.mxu1 %v4744_v53  ;;  %v4713_v53 = vld [vmem:[%s5214_s10 + $0x374] ss:$36 sps:$4 sm:$0xff]  }
 0x168   : > { %3922 = vmatprep.subr.bf16.mxu1 %v4745_v54  ;;  %v4715_v54 = vld [vmem:[%s5214_s10 + $0x370] ss:$36 sps:$4 sm:$0xff]  }
 0x169   : > { %2328 = vmatmul.mubr.bf16.gmra.mrb[16].mxu1 %v4639_v49  ;;  %v4708_v49 = vld [vmem:[%s5214_s10 + $0x2f0] ss:$36 sps:$4 sm:$0xff]  }
 0x16a   : > { %2794 = vmatmul.mubr.bf16.gmra.mrb[48].mxu0 %v4640_v50  ;;  %2337 = vmatprep.mubr.bf16.mxu1 %v4644_v51  ;;  %v4709_v50 = vld [vmem:[%s5214_s10 + $0x32c] ss:$36 sps:$4 sm:$0xff]  }
 0x16b   : > { %2803 = vmatprep.mubr.bf16.mxu0 %v4646_v52  ;;  %3938 = vmatpush1.bf16.msra.mxu1 %v4746_v55  ;;  %v4711_v51 = vld [vmem:[%s5214_s10 + $0x328] ss:$36 sps:$4 sm:$0xff]   ;;  %v4712_v52 = vld [vmem:[%s5214_s10 + $0x338] ss:$36 sps:$4 sm:$0xff]   ;;  %v4716_v55 = vld [vmem:[%s5214_s10 + $0x380] ss:$36 sps:$4 sm:$0xff]  }
 0x16c   : > { %3923 = vmatprep.subr.bf16.mxu1 %v4747_v56  ;;  %v4717_v56 = vld [vmem:[%s5214_s10 + $0x3bc] ss:$36 sps:$4 sm:$0xff]  }
 0x16f   : > { %3939 = vmatpush1.bf16.msra.mxu1 %v4748_v61  ;;  %v4724_v61 = vld [vmem:[%s5214_s10 + $0x410] ss:$36 sps:$4 sm:$0xff]  }
 0x170   : > { %3924 = vmatprep.subr.bf16.mxu1 %v4749_v62  ;;  %v4725_v62 = vld [vmem:[%s5214_s10 + $0x44c] ss:$36 sps:$4 sm:$0xff]  }
 0x171   : > { %2338 = vmatmul.mubr.bf16.gmra.mrb[20].mxu1 %v4648_v57  ;;  %v4719_v57 = vld [vmem:[%s5214_s10 + $0x3b8] ss:$36 sps:$4 sm:$0xff]  }
 0x172   : > { %2804 = vmatmul.mubr.bf16.gmra.mrb[52].mxu0 %v4649_v58  ;;  %2347 = vmatprep.mubr.bf16.mxu1 %v4650_v59  ;;  %v4720_v58 = vld [vmem:[%s5214_s10 + $0x3c8] ss:$36 sps:$4 sm:$0xff]  }
 0x173   : > { %2813 = vmatprep.mubr.bf16.mxu0 %v4652_v60  ;;  %3940 = vmatpush1.bf16.msra.mxu1 %v4750_v63  ;;  %v4721_v59 = vld [vmem:[%s5214_s10 + $0x404] ss:$36 sps:$4 sm:$0xff]  }
 0x174   : > { %3925 = vmatprep.subr.bf16.mxu1 %v4751_v0  ;;  %v4723_v60 = vld [vmem:[%s5214_s10 + $0x400] ss:$36 sps:$4 sm:$0xff]   ;;  %v4727_v63 = vld [vmem:[%s5214_s10 + $0x448] ss:$36 sps:$4 sm:$0xff]   ;;  %v4728_v0 = vld [vmem:[%s5214_s10 + $0x458] ss:$36 sps:$4 sm:$0xff]  }
 0x177   : > { %3941 = vmatpush1.bf16.msra.mxu1 %v4752_v5 }
 0x178   : > { %3926 = vmatprep.subr.bf16.mxu1 %v4753_v6 }
 0x179   : > { %2348 = vmatmul.mubr.bf16.gmra.mrb[24].mxu1 %v4654_v1 }
 0x17a   : > { %2814 = vmatmul.mubr.bf16.gmra.mrb[56].mxu0 %v4655_v2  ;;  %2357 = vmatprep.mubr.bf16.mxu1 %v4659_v3 }
 0x17b   : > { %2823 = vmatprep.mubr.bf16.mxu0 %v4661_v4  ;;  %3942 = vmatpush1.bf16.msra.mxu1 %v4754_v7 }
 0x17c   : > { %3927 = vmatprep.subr.bf16.mxu1 %v4755_v8 }
 0x17f   : > { %3943 = vmatpush1.bf16.msra.mxu1 %v4756_v12 }
 0x180   : > { %3928 = vmatprep.subr.bf16.mxu1 %v4757_v13 }
 0x181   : > { %2358 = vmatmul.mubr.bf16.gmra.mrb[28].mxu1 %v4663_v9 }
 0x182   : > { %2824 = vmatmul.mubr.bf16.gmra.mrb[60].mxu0 %v4664_v10  ;;  %2367 = vmatprep.mubr.bf16.mxu1 %v4665_v11 }
 0x183   : > { %2866 = vmatprep.mubr.bf16.mxu0 %v4975_v14  ;;  %3944 = vmatpush1.bf16.msra.mxu1 %v4758_v15 }
 0x184   : > { %3929 = vmatprep.subr.bf16.mxu1 %v4759_v16 }
 0x187   : > { %3945 = vmatpush1.bf16.msra.mxu1 %v4760_v20 }
 0x189   : > { %2368 = vmatmul.mubr.bf16.gmra.mrb[32].mxu1 %v4667_v17 }
 0x18a   : > { %2867 = vmatmul.mubr.bf16.vlgmr.msra.gmra.mrb[0].mxu0 %v4668_v18  ;;  %2377 = vmatprep.mubr.bf16.mxu1 %v4669_v19 }
 0x18b   : > { %2876 = vmatprep.mubr.bf16.mxu0 %v4975_v14 }
 0x191   : > { %2378 = vmatmul.mubr.bf16.gmra.mrb[36].mxu1 %v4671_v21 }
 0x192   : > { %2877 = vmatmul.mubr.bf16.gmra.mrb[4].mxu0 %v4672_v22  ;;  %2387 = vmatprep.mubr.bf16.mxu1 %v4673_v23 }
 0x193   : > { %2886 = vmatprep.mubr.bf16.mxu0 %v4975_v14 }
 0x199   : > { %2388 = vmatmul.mubr.bf16.gmra.mrb[40].mxu1 %v4675_v24 }
 0x19a   : > { %2887 = vmatmul.mubr.bf16.gmra.mrb[8].mxu0 %v4676_v25  ;;  %2397 = vmatprep.mubr.bf16.mxu1 %v4677_v26 }
 0x19b   : > { %2896 = vmatprep.mubr.bf16.mxu0 %v4975_v14 }
 0x1a1   : > { %2398 = vmatmul.mubr.bf16.gmra.mrb[44].mxu1 %v4679_v27 }
 0x1a2   : > { %2897 = vmatmul.mubr.bf16.gmra.mrb[12].mxu0 %v4680_v28  ;;  %2407 = vmatprep.mubr.bf16.mxu1 %v4681_v29  ;;  %v3029_v29 = vlaneseq }
 0x1a3   : > { %2906 = vmatprep.mubr.bf16.mxu0 %v4975_v14 }
 0x1a9   : > { %2408 = vmatmul.mubr.bf16.gmra.mrb[48].mxu1 %v4683_v30  ;;  %v3030_v30 = vshrl.u32 %v3029_v29, 7 }
 0x1aa   : > { %2907 = vmatmul.mubr.bf16.gmra.mrb[16].mxu0 %v4684_v31  ;;  %2417 = vmatprep.mubr.bf16.mxu1 %v4685_v32 }
 0x1ab   : > { %2916 = vmatprep.mubr.bf16.mxu0 %v4975_v14 }
 0x1b1   : > { %2418 = vmatmul.mubr.bf16.gmra.mrb[52].mxu1 %v4687_v33 }
 0x1b2   : > { %2917 = vmatmul.mubr.bf16.gmra.mrb[20].mxu0 %v4688_v34  ;;  %2427 = vmatprep.mubr.bf16.mxu1 %v4689_v35  ;;  %v3031_v35 = vsub.s32 0, %v3030_v30 }
 0x1b3   : > { %2926 = vmatprep.mubr.bf16.mxu0 %v4975_v14 }
 0x1b9   : > { %2428 = vmatmul.mubr.bf16.gmra.mrb[56].mxu1 %v4691_v36  ;;  %v3027_v36 = vld [vmem:[#allocation7] sm:$0x3] }
 0x1ba   : > { %2927 = vmatmul.mubr.bf16.gmra.mrb[24].mxu0 %v4692_v37  ;;  %2437 = vmatprep.mubr.bf16.mxu1 %v4693_v38  ;;  %v3035_v37 = vsub.s32 1, %v3030_v30  ;;  %v3103_v38 = vld [vmem:[#allocation8] sm:$0x3] }
 0x1bb   : > { %2936 = vmatprep.mubr.bf16.mxu0 %v4975_v14 }
 0x1c1   : > { %2438 = vmatmul.mubr.bf16.gmra.mrb[60].mxu1 %v4695_v39  ;;  %v5440_v39 = vrot.slane %v3027_v36, %v3031_v35 }
 0x1c2   : > { %2937 = vmatmul.mubr.bf16.gmra.mrb[28].mxu0 %v4696_v40  ;;  %2560 = vmatprep.mubr.bf16.mxu1 %v4699_v41  ;;  %v5442_v41 = vrot.slane %v3027_v36, %v3035_v37 }
 0x1c3   : > { %2946 = vmatprep.mubr.bf16.mxu0 %v4975_v14 }
 0x1c9   : > { %2561 = vmatmul.mubr.bf16.vlgmr.msra.gmra.mrb[32].mxu1 %v4697_v42 }
 0x1ca   : > { %2947 = vmatmul.mubr.bf16.gmra.mrb[32].mxu0 %v4700_v43  ;;  %2570 = vmatprep.mubr.bf16.mxu1 %v4701_v44  ;;  %v5444_v43 = vrot.slane %v3103_v38, %v3031_v35 }
 0x1cb   : > { %2956 = vmatprep.mubr.bf16.mxu0 %v4975_v14 }
 0x1d1   : > { %2571 = vmatmul.mubr.bf16.gmra.mrb[36].mxu1 %v4703_v45 }
 0x1d2   : > { %2957 = vmatmul.mubr.bf16.gmra.mrb[36].mxu0 %v4704_v46  ;;  %2580 = vmatprep.mubr.bf16.mxu1 %v4705_v47  ;;  %v5446_v46 = vrot.slane %v3103_v38, %v3035_v37 }
 0x1d3   : > { %2966 = vmatprep.mubr.bf16.mxu0 %v4975_v14 }
 0x1d9   : > { %2581 = vmatmul.mubr.bf16.gmra.mrb[40].mxu1 %v4707_v48 }
 0x1da   : > { %2967 = vmatmul.mubr.bf16.gmra.mrb[40].mxu0 %v4708_v49  ;;  %2590 = vmatprep.mubr.bf16.mxu1 %v4709_v50 }
 0x1db   : > { %2976 = vmatprep.mubr.bf16.mxu0 %v4975_v14 }
 0x1e1   : > { %2591 = vmatmul.mubr.bf16.gmra.mrb[44].mxu1 %v4711_v51 }
 0x1e2   : > { %2977 = vmatmul.mubr.bf16.gmra.mrb[44].mxu0 %v4712_v52  ;;  %2600 = vmatprep.mubr.bf16.mxu1 %v4713_v53 }
 0x1e3   : > { %2986 = vmatprep.mubr.bf16.mxu0 %v4975_v14 }
 0x1e9   : > { %2601 = vmatmul.mubr.bf16.gmra.mrb[48].mxu1 %v4715_v54 }
 0x1ea   : > { %2987 = vmatmul.mubr.bf16.gmra.mrb[48].mxu0 %v4716_v55  ;;  %2610 = vmatprep.mubr.bf16.mxu1 %v4717_v56 }
 0x1eb   : > { %2996 = vmatprep.mubr.bf16.mxu0 %v4975_v14 }
 0x1f1   : > { %2611 = vmatmul.mubr.bf16.gmra.mrb[52].mxu1 %v4719_v57 }
 0x1f2   : > { %2997 = vmatmul.mubr.bf16.gmra.mrb[52].mxu0 %v4720_v58  ;;  %2620 = vmatprep.mubr.bf16.mxu1 %v4721_v59 }
 0x1f3   : > { %3006 = vmatprep.mubr.bf16.mxu0 %v4975_v14 }
 0x1f9   : > { %2621 = vmatmul.mubr.bf16.gmra.mrb[56].mxu1 %v4723_v60 }
 0x1fa   : > { %3007 = vmatmul.mubr.bf16.gmra.mrb[56].mxu0 %v4724_v61  ;;  %2630 = vmatprep.mubr.bf16.mxu1 %v4725_v62 }
 0x1fb   : > { %3016 = vmatprep.mubr.bf16.mxu0 %v4975_v14 }
 0x201   : > { %2631 = vmatmul.mubr.bf16.gmra.mrb[60].mxu1 %v4727_v63 }
 0x202   : > { %3017 = vmatmul.mubr.bf16.gmra.mrb[60].mxu0 %v4728_v0 }
 0x21c   : > { %v2289_v1 = vpop.f32.mrb[0].mxu1 }
 0x21d   : > { %v2291_v2 = vpop.f32.mrb[1].mxu1 }
 0x21e   : > { %v2293_v3 = vpop.f32.mrb[2].mxu1 }
 0x21f   : > { %v2295_v4 = vpop.f32.mrb[3].mxu1 }
 0x224   : > { %v2299_v5 = vpop.f32.mrb[4].mxu1 }
 0x225   : > { %v2301_v6 = vpop.f32.mrb[5].mxu1 }
 0x226   : > { %v5388_v7 = vpop.f32.mrb[6].mxu1 }
 0x227   : > { %v5390_v8 = vpop.f32.mrb[7].mxu1 }
 0x22c   : > { %v5392_v9 = vpop.f32.mrb[8].mxu1 }
 0x22d   : > { %v5394_v10 = vpop.f32.mrb[9].mxu1 }
 0x22e   : > { %v5396_v11 = vpop.f32.mrb[10].mxu1 }
 0x22f   : > { %v5398_v12 = vpop.f32.mrb[11].mxu1 }
 0x234   : > { %v5400_v13 = vpop.f32.mrb[12].mxu1 }
 0x235   : > { %v5402_v14 = vpop.f32.mrb[13].mxu1 }
 0x236   : > { %v5404_v15 = vpop.f32.mrb[14].mxu1 }
 0x237   : > { %v5406_v16 = vpop.f32.mrb[15].mxu1 }
 0x23c   : > { %v5408_v17 = vpop.f32.mrb[16].mxu1 }
 0x23d   : > { %v5410_v18 = vpop.f32.mrb[17].mxu1 }
 0x23e   : > { %v5412_v19 = vpop.f32.mrb[18].mxu1 }
 0x23f   : > { %v5414_v20 = vpop.f32.mrb[19].mxu1 }
 0x244   : > { %v5416_v21 = vpop.f32.mrb[20].mxu1 }
 0x245   : > { %v5418_v22 = vpop.f32.mrb[21].mxu1 }
 0x246   : > { %v5420_v23 = vpop.f32.mrb[22].mxu1 }
 0x247   : > { %v5422_v24 = vpop.f32.mrb[23].mxu1 }
 0x24c   : > { %v5424_v25 = vpop.f32.mrb[24].mxu1 }
 0x24d   : > { %v5426_v26 = vpop.f32.mrb[25].mxu1 }
 0x24e   : > { %v5428_v27 = vpop.f32.mrb[26].mxu1 }
 0x24f   : > { %v5430_v28 = vpop.f32.mrb[27].mxu1 }
 0x254   : > { %v5432_v31 = vpop.f32.mrb[28].mxu1 }
 0x255   : > { %v5434_v32 = vpop.f32.mrb[29].mxu1 }
 0x256   : > { %v5436_v33 = vpop.f32.mrb[30].mxu1 }
 0x257   : > { %v5438_v34 = vpop.f32.mrb[31].mxu1 }
 0x25d   : > { %v2868_v40 = vpop.f32.mrb[0].mxu0 }
 0x25e   : > { %v3946_v42 = vadd.f32 %v2868_v40, %v2289_v1  ;;  %v2870_v44 = vpop.f32.mrb[1].mxu0 }
 0x25f   : > { %v3947_v45 = vadd.f32 %v2870_v44, %v2291_v2  ;;  %v2872_v47 = vpop.f32.mrb[2].mxu0 }
 0x260   : > { %v3039_v48 = vmul.f32 %v3946_v42, %v5440_v39  ;;  %v3948_v49 = vadd.f32 %v2872_v47, %v2293_v3  ;;  %v2874_v50 = vpop.f32.mrb[3].mxu0 }
 0x261   : > { %v3040_v51 = vmul.f32 %v3947_v45, %v5442_v41  ;;  %v3949_v52 = vadd.f32 %v2874_v50, %v2295_v4 }
 0x262   : > { %v3115_v53 = vadd.f32 %v5444_v43, %v3039_v48  ;;  %v3041_v54 = vmul.f32 %v3948_v49, %v5440_v39 }
 0x263   : > { %v3116_v55 = vadd.f32 %v5446_v46, %v3040_v51  ;;  %v3042_v56 = vmul.f32 %v3949_v52, %v5442_v41 }
 0x264   : > { %v3117_v57 = vadd.f32 %v5444_v43, %v3041_v54 }
 0x265   : > { %v3880_v58 = vpack.c.bf16 %v3116_v55, %v3115_v53  ;;  %v3118_v59 = vadd.f32 %v5446_v46, %v3042_v56  ;;  %v2878_v60 = vpop.f32.mrb[4].mxu0 }
 0x266   : > { %v3950_v61 = vadd.f32 %v2878_v60, %v2299_v5  ;;  %v2880_v62 = vpop.f32.mrb[5].mxu0 }
 0x267   : > { %3371 = vst [vmem:[%s5457_s25] sm:$0xff] %v3880_v58  ;;  %v3881_v63 = vpack.c.bf16 %v3118_v59, %v3117_v57  ;;  %v3951_v0 = vadd.f32 %v2880_v62, %v2301_v6  ;;  %v2882_v1 = vpop.f32.mrb[6].mxu0 }
 0x268   : > { %v3043_v2 = vmul.f32 %v3950_v61, %v5440_v39  ;;  %v3952_v3 = vadd.f32 %v2882_v1, %v5388_v7  ;;  %v2884_v4 = vpop.f32.mrb[7].mxu0 }
 0x269   : > { %3372 = vst [vmem:[%s5457_s25 + $0x8] sm:$0xff] %v3881_v63  ;;  %v3044_v29 = vmul.f32 %v3951_v0, %v5442_v41  ;;  %v3953_v5 = vadd.f32 %v2884_v4, %v5390_v8 }
 0x26a   : > { %v3119_v30 = vadd.f32 %v5444_v43, %v3043_v2  ;;  %v3045_v35 = vmul.f32 %v3952_v3, %v5440_v39 }
 0x26b   : > { %v3120_v36 = vadd.f32 %v5446_v46, %v3044_v29  ;;  %v3046_v6 = vmul.f32 %v3953_v5, %v5442_v41 }
 0x26c   : > { %v3121_v37 = vadd.f32 %v5444_v43, %v3045_v35 }
 0x26d   : > { %v3882_v38 = vpack.c.bf16 %v3120_v36, %v3119_v30  ;;  %v3122_v7 = vadd.f32 %v5446_v46, %v3046_v6  ;;  %v2888_v40 = vpop.f32.mrb[8].mxu0 }
 0x26e   : > { %v3954_v42 = vadd.f32 %v2888_v40, %v5392_v9  ;;  %v2890_v44 = vpop.f32.mrb[9].mxu0 }
 0x26f   : > { %3373 = vst [vmem:[%s5457_s25 + $0x10] sm:$0xff] %v3882_v38  ;;  %v3883_v8 = vpack.c.bf16 %v3122_v7, %v3121_v37  ;;  %v3955_v45 = vadd.f32 %v2890_v44, %v5394_v10  ;;  %v2892_v47 = vpop.f32.mrb[10].mxu0 }
 0x270   : > { %v3047_v48 = vmul.f32 %v3954_v42, %v5440_v39  ;;  %v3956_v49 = vadd.f32 %v2892_v47, %v5396_v11  ;;  %v2894_v50 = vpop.f32.mrb[11].mxu0 }
 0x271   : > { %3374 = vst [vmem:[%s5457_s25 + $0x18] sm:$0xff] %v3883_v8  ;;  %v3048_v51 = vmul.f32 %v3955_v45, %v5442_v41  ;;  %v3957_v52 = vadd.f32 %v2894_v50, %v5398_v12 }
 0x272   : > { %v3123_v53 = vadd.f32 %v5444_v43, %v3047_v48  ;;  %v3049_v9 = vmul.f32 %v3956_v49, %v5440_v39 }
 0x273   : > { %v3124_v54 = vadd.f32 %v5446_v46, %v3048_v51  ;;  %v3050_v10 = vmul.f32 %v3957_v52, %v5442_v41 }
 0x274   : > { %v3125_v55 = vadd.f32 %v5444_v43, %v3049_v9 }
 0x275   : > { %v3884_v56 = vpack.c.bf16 %v3124_v54, %v3123_v53  ;;  %v3126_v11 = vadd.f32 %v5446_v46, %v3050_v10  ;;  %v2898_v57 = vpop.f32.mrb[12].mxu0 }
 0x276   : > { %v3958_v58 = vadd.f32 %v2898_v57, %v5400_v13  ;;  %v2900_v59 = vpop.f32.mrb[13].mxu0 }
 0x277   : > { %3375 = vst [vmem:[%s5457_s25 + $0x20] sm:$0xff] %v3884_v56  ;;  %v3885_v12 = vpack.c.bf16 %v3126_v11, %v3125_v55  ;;  %v3959_v60 = vadd.f32 %v2900_v59, %v5402_v14  ;;  %v2902_v61 = vpop.f32.mrb[14].mxu0 }
 0x278   : > { %v3051_v62 = vmul.f32 %v3958_v58, %v5440_v39  ;;  %v3960_v63 = vadd.f32 %v2902_v61, %v5404_v15  ;;  %v2904_v0 = vpop.f32.mrb[15].mxu0 }
 0x279   : > { %3376 = vst [vmem:[%s5457_s25 + $0x28] sm:$0xff] %v3885_v12  ;;  %v3052_v1 = vmul.f32 %v3959_v60, %v5442_v41  ;;  %v3961_v2 = vadd.f32 %v2904_v0, %v5406_v16 }
 0x27a   : > { %v3127_v3 = vadd.f32 %v5444_v43, %v3051_v62  ;;  %v3053_v13 = vmul.f32 %v3960_v63, %v5440_v39 }
 0x27b   : > { %v3128_v4 = vadd.f32 %v5446_v46, %v3052_v1  ;;  %v3054_v14 = vmul.f32 %v3961_v2, %v5442_v41 }
 0x27c   : > { %v3129_v29 = vadd.f32 %v5444_v43, %v3053_v13 }
 0x27d   : > { %v3886_v5 = vpack.c.bf16 %v3128_v4, %v3127_v3  ;;  %v3130_v15 = vadd.f32 %v5446_v46, %v3054_v14  ;;  %v2908_v30 = vpop.f32.mrb[16].mxu0 }
 0x27e   : > { %v3962_v35 = vadd.f32 %v2908_v30, %v5408_v17  ;;  %v2910_v36 = vpop.f32.mrb[17].mxu0 }
 0x27f   : > { %3377 = vst [vmem:[%s5457_s25 + $0x30] sm:$0xff] %v3886_v5  ;;  %v3887_v16 = vpack.c.bf16 %v3130_v15, %v3129_v29  ;;  %v3963_v6 = vadd.f32 %v2910_v36, %v5410_v18  ;;  %v2912_v37 = vpop.f32.mrb[18].mxu0 }
 0x280   : > { %v3055_v38 = vmul.f32 %v3962_v35, %v5440_v39  ;;  %v3964_v7 = vadd.f32 %v2912_v37, %v5412_v19  ;;  %v2914_v40 = vpop.f32.mrb[19].mxu0 }
 0x281   : > { %3378 = vst [vmem:[%s5457_s25 + $0x38] sm:$0xff] %v3887_v16  ;;  %v3056_v42 = vmul.f32 %v3963_v6, %v5442_v41  ;;  %v3965_v44 = vadd.f32 %v2914_v40, %v5414_v20 }
 0x282   : > { %v3131_v8 = vadd.f32 %v5444_v43, %v3055_v38  ;;  %v3057_v17 = vmul.f32 %v3964_v7, %v5440_v39 }
 0x283   : > { %v3132_v45 = vadd.f32 %v5446_v46, %v3056_v42  ;;  %v3058_v18 = vmul.f32 %v3965_v44, %v5442_v41 }
 0x284   : > { %v3133_v47 = vadd.f32 %v5444_v43, %v3057_v17 }
 0x285   : > { %v3888_v48 = vpack.c.bf16 %v3132_v45, %v3131_v8  ;;  %v3134_v19 = vadd.f32 %v5446_v46, %v3058_v18  ;;  %v2918_v49 = vpop.f32.mrb[20].mxu0 }
 0x286   : > { %v3966_v50 = vadd.f32 %v2918_v49, %v5416_v21  ;;  %v2920_v51 = vpop.f32.mrb[21].mxu0 }
 0x287   : > { %3379 = vst [vmem:[%s5457_s25 + $0x40] sm:$0xff] %v3888_v48  ;;  %v3889_v20 = vpack.c.bf16 %v3134_v19, %v3133_v47  ;;  %v3967_v52 = vadd.f32 %v2920_v51, %v5418_v22  ;;  %v2922_v53 = vpop.f32.mrb[22].mxu0 }
 0x288   : > { %v3059_v9 = vmul.f32 %v3966_v50, %v5440_v39  ;;  %v3968_v54 = vadd.f32 %v2922_v53, %v5420_v23  ;;  %v2924_v10 = vpop.f32.mrb[23].mxu0 }
 0x289   : > { %3380 = vst [vmem:[%s5457_s25 + $0x48] sm:$0xff] %v3889_v20  ;;  %v3060_v55 = vmul.f32 %v3967_v52, %v5442_v41  ;;  %v3969_v56 = vadd.f32 %v2924_v10, %v5422_v24 }
 0x28a   : > { %v3135_v11 = vadd.f32 %v5444_v43, %v3059_v9  ;;  %v3061_v21 = vmul.f32 %v3968_v54, %v5440_v39 }
 0x28b   : > { %v3136_v57 = vadd.f32 %v5446_v46, %v3060_v55  ;;  %v3062_v22 = vmul.f32 %v3969_v56, %v5442_v41 }
 0x28c   : > { %v3137_v58 = vadd.f32 %v5444_v43, %v3061_v21 }
 0x28d   : > { %v3890_v59 = vpack.c.bf16 %v3136_v57, %v3135_v11  ;;  %v3138_v23 = vadd.f32 %v5446_v46, %v3062_v22  ;;  %v2928_v12 = vpop.f32.mrb[24].mxu0 }
 0x28e   : > { %v3970_v60 = vadd.f32 %v2928_v12, %v5424_v25  ;;  %v2930_v61 = vpop.f32.mrb[25].mxu0 }
 0x28f   : > { %3381 = vst [vmem:[%s5457_s25 + $0x50] sm:$0xff] %v3890_v59  ;;  %v3891_v24 = vpack.c.bf16 %v3138_v23, %v3137_v58  ;;  %v3971_v62 = vadd.f32 %v2930_v61, %v5426_v26  ;;  %v2932_v63 = vpop.f32.mrb[26].mxu0 }
 0x290   : > { %v3063_v0 = vmul.f32 %v3970_v60, %v5440_v39  ;;  %v3972_v1 = vadd.f32 %v2932_v63, %v5428_v27  ;;  %v2934_v2 = vpop.f32.mrb[27].mxu0 }
 0x291   : > { %3382 = vst [vmem:[%s5457_s25 + $0x58] sm:$0xff] %v3891_v24  ;;  %v3064_v3 = vmul.f32 %v3971_v62, %v5442_v41  ;;  %v3973_v13 = vadd.f32 %v2934_v2, %v5430_v28 }
 0x292   : > { %v3139_v4 = vadd.f32 %v5444_v43, %v3063_v0  ;;  %v3065_v25 = vmul.f32 %v3972_v1, %v5440_v39 }
 0x293   : > { %v3140_v14 = vadd.f32 %v5446_v46, %v3064_v3  ;;  %v3066_v26 = vmul.f32 %v3973_v13, %v5442_v41 }
 0x294   : > { %v3141_v29 = vadd.f32 %v5444_v43, %v3065_v25 }
 0x295   : > { %v3892_v5 = vpack.c.bf16 %v3140_v14, %v3139_v4  ;;  %v3142_v27 = vadd.f32 %v5446_v46, %v3066_v26  ;;  %v2938_v15 = vpop.f32.mrb[28].mxu0 }
 0x296   : > { %v3974_v30 = vadd.f32 %v2938_v15, %v5432_v31  ;;  %v2940_v35 = vpop.f32.mrb[29].mxu0 }
 0x297   : > { %3383 = vst [vmem:[%s5457_s25 + $0x60] sm:$0xff] %v3892_v5  ;;  %v3893_v28 = vpack.c.bf16 %v3142_v27, %v3141_v29  ;;  %v3975_v36 = vadd.f32 %v2940_v35, %v5434_v32  ;;  %v2942_v16 = vpop.f32.mrb[30].mxu0 }
 0x298   : > { %v3067_v6 = vmul.f32 %v3974_v30, %v5440_v39  ;;  %v3976_v37 = vadd.f32 %v2942_v16, %v5436_v33  ;;  %v2944_v38 = vpop.f32.mrb[31].mxu0 }
 0x299   : > { %3384 = vst [vmem:[%s5457_s25 + $0x68] sm:$0xff] %v3893_v28  ;;  %v3068_v7 = vmul.f32 %v3975_v36, %v5442_v41  ;;  %v3977_v40 = vadd.f32 %v2944_v38, %v5438_v34 }
 0x29a   : > { %v3143_v42 = vadd.f32 %v5444_v43, %v3067_v6  ;;  %v3069_v31 = vmul.f32 %v3976_v37, %v5440_v39 }
 0x29b   : > { %v3144_v44 = vadd.f32 %v5446_v46, %v3068_v7  ;;  %v3070_v32 = vmul.f32 %v3977_v40, %v5442_v41 }
 0x29c   : > { %v3145_v8 = vadd.f32 %v5444_v43, %v3069_v31  ;;  %v2562_v45 = vpop.f32.mrb[32].mxu1 }
 0x29d   : > { %v3894_v17 = vpack.c.bf16 %v3144_v44, %v3143_v42  ;;  %v3146_v33 = vadd.f32 %v5446_v46, %v3070_v32  ;;  %v2948_v18 = vpop.f32.mrb[32].mxu0  ;;  %v2564_v48 = vpop.f32.mrb[33].mxu1 }
 0x29e   : > { %v3978_v47 = vadd.f32 %v2948_v18, %v2562_v45  ;;  %v2950_v19 = vpop.f32.mrb[33].mxu0  ;;  %v2566_v50 = vpop.f32.mrb[34].mxu1 }
 0x29f   : > { %3385 = vst [vmem:[%s5457_s25 + $0x70] sm:$0xff] %v3894_v17  ;;  %v3895_v34 = vpack.c.bf16 %v3146_v33, %v3145_v8  ;;  %v3979_v49 = vadd.f32 %v2950_v19, %v2564_v48  ;;  %v2952_v51 = vpop.f32.mrb[34].mxu0  ;;  %v2568_v53 = vpop.f32.mrb[35].mxu1 }
 0x2a0   : > { %v3071_v20 = vmul.f32 %v3978_v47, %v5440_v39  ;;  %v3980_v52 = vadd.f32 %v2952_v51, %v2566_v50  ;;  %v2954_v9 = vpop.f32.mrb[35].mxu0 }
 0x2a1   : > { %3386 = vst [vmem:[%s5457_s25 + $0x78] sm:$0xff] %v3895_v34  ;;  %v3072_v54 = vmul.f32 %v3979_v49, %v5442_v41  ;;  %v3981_v10 = vadd.f32 %v2954_v9, %v2568_v53 }
 0x2a2   : > { %v3147_v55 = vadd.f32 %v5444_v43, %v3071_v20  ;;  %v3073_v56 = vmul.f32 %v3980_v52, %v5440_v39 }
 0x2a3   : > { %v3148_v11 = vadd.f32 %v5446_v46, %v3072_v54  ;;  %v3074_v21 = vmul.f32 %v3981_v10, %v5442_v41 }
 0x2a4   : > { %v3149_v57 = vadd.f32 %v5444_v43, %v3073_v56  ;;  %v2572_v59 = vpop.f32.mrb[36].mxu1 }
 0x2a5   : > { %v3896_v22 = vpack.c.bf16 %v3148_v11, %v3147_v55  ;;  %v3150_v58 = vadd.f32 %v5446_v46, %v3074_v21  ;;  %v2958_v23 = vpop.f32.mrb[36].mxu0  ;;  %v2574_v60 = vpop.f32.mrb[37].mxu1 }
 0x2a6   : > { %v3982_v12 = vadd.f32 %v2958_v23, %v2572_v59  ;;  %v2960_v61 = vpop.f32.mrb[37].mxu0  ;;  %v2576_v63 = vpop.f32.mrb[38].mxu1 }
 0x2a7   : > { %3387 = vst [vmem:[%s5457_s25 + $0x80] sm:$0xff] %v3896_v22  ;;  %v3897_v24 = vpack.c.bf16 %v3150_v58, %v3149_v57  ;;  %v3983_v62 = vadd.f32 %v2960_v61, %v2574_v60  ;;  %v2962_v0 = vpop.f32.mrb[38].mxu0  ;;  %v2578_v3 = vpop.f32.mrb[39].mxu1 }
 0x2a8   : > { %v3075_v1 = vmul.f32 %v3982_v12, %v5440_v39  ;;  %v3984_v2 = vadd.f32 %v2962_v0, %v2576_v63  ;;  %v2964_v13 = vpop.f32.mrb[39].mxu0 }
 0x2a9   : > { %3388 = vst [vmem:[%s5457_s25 + $0x88] sm:$0xff] %v3897_v24  ;;  %v3076_v4 = vmul.f32 %v3983_v62, %v5442_v41  ;;  %v3985_v25 = vadd.f32 %v2964_v13, %v2578_v3 }
 0x2aa   : > { %v3151_v14 = vadd.f32 %v5444_v43, %v3075_v1  ;;  %v3077_v26 = vmul.f32 %v3984_v2, %v5440_v39 }
 0x2ab   : > { %v3152_v29 = vadd.f32 %v5446_v46, %v3076_v4  ;;  %v3078_v5 = vmul.f32 %v3985_v25, %v5442_v41 }
 0x2ac   : > { %v3153_v27 = vadd.f32 %v5444_v43, %v3077_v26  ;;  %v2582_v35 = vpop.f32.mrb[40].mxu1 }
 0x2ad   : > { %v3898_v15 = vpack.c.bf16 %v3152_v29, %v3151_v14  ;;  %v3154_v30 = vadd.f32 %v5446_v46, %v3078_v5  ;;  %v2968_v28 = vpop.f32.mrb[40].mxu0  ;;  %v2584_v16 = vpop.f32.mrb[41].mxu1 }
 0x2ae   : > { %v3986_v36 = vadd.f32 %v2968_v28, %v2582_v35  ;;  %v2970_v6 = vpop.f32.mrb[41].mxu0  ;;  %v2586_v7 = vpop.f32.mrb[42].mxu1 }
 0x2af   : > { %3389 = vst [vmem:[%s5457_s25 + $0x90] sm:$0xff] %v3898_v15  ;;  %v3899_v37 = vpack.c.bf16 %v3154_v30, %v3153_v27  ;;  %v3987_v38 = vadd.f32 %v2970_v6, %v2584_v16  ;;  %v2972_v40 = vpop.f32.mrb[42].mxu0  ;;  %v2588_v44 = vpop.f32.mrb[43].mxu1 }
 0x2b0   : > { %v3079_v42 = vmul.f32 %v3986_v36, %v5440_v39  ;;  %v3988_v31 = vadd.f32 %v2972_v40, %v2586_v7  ;;  %v2974_v32 = vpop.f32.mrb[43].mxu0 }
 0x2b1   : > { %3390 = vst [vmem:[%s5457_s25 + $0x98] sm:$0xff] %v3899_v37  ;;  %v3080_v8 = vmul.f32 %v3987_v38, %v5442_v41  ;;  %v3989_v17 = vadd.f32 %v2974_v32, %v2588_v44 }
 0x2b2   : > { %v3155_v33 = vadd.f32 %v5444_v43, %v3079_v42  ;;  %v3081_v45 = vmul.f32 %v3988_v31, %v5440_v39 }
 0x2b3   : > { %v3156_v18 = vadd.f32 %v5446_v46, %v3080_v8  ;;  %v3082_v47 = vmul.f32 %v3989_v17, %v5442_v41 }
 0x2b4   : > { %v3157_v48 = vadd.f32 %v5444_v43, %v3081_v45  ;;  %v2592_v49 = vpop.f32.mrb[44].mxu1 }
 0x2b5   : > { %v3900_v19 = vpack.c.bf16 %v3156_v18, %v3155_v33  ;;  %v3158_v34 = vadd.f32 %v5446_v46, %v3082_v47  ;;  %v2978_v50 = vpop.f32.mrb[44].mxu0  ;;  %v2594_v20 = vpop.f32.mrb[45].mxu1 }
 0x2b6   : > { %v3990_v51 = vadd.f32 %v2978_v50, %v2592_v49  ;;  %v2980_v52 = vpop.f32.mrb[45].mxu0  ;;  %v2596_v54 = vpop.f32.mrb[46].mxu1 }
 0x2b7   : > { %3391 = vst [vmem:[%s5457_s25 + $0xa0] sm:$0xff] %v3900_v19  ;;  %v3901_v53 = vpack.c.bf16 %v3158_v34, %v3157_v48  ;;  %v3991_v9 = vadd.f32 %v2980_v52, %v2594_v20  ;;  %v2982_v10 = vpop.f32.mrb[46].mxu0  ;;  %v2598_v11 = vpop.f32.mrb[47].mxu1 }
 0x2b8   : > { %v3083_v55 = vmul.f32 %v3990_v51, %v5440_v39  ;;  %v3992_v56 = vadd.f32 %v2982_v10, %v2596_v54  ;;  %v2984_v21 = vpop.f32.mrb[47].mxu0 }
 0x2b9   : > { %3392 = vst [vmem:[%s5457_s25 + $0xa8] sm:$0xff] %v3901_v53  ;;  %v3084_v57 = vmul.f32 %v3991_v9, %v5442_v41  ;;  %v3993_v22 = vadd.f32 %v2984_v21, %v2598_v11 }
 0x2ba   : > { %v3159_v58 = vadd.f32 %v5444_v43, %v3083_v55  ;;  %v3085_v59 = vmul.f32 %v3992_v56, %v5440_v39 }
 0x2bb   : > { %v3160_v23 = vadd.f32 %v5446_v46, %v3084_v57  ;;  %v3086_v12 = vmul.f32 %v3993_v22, %v5442_v41 }
 0x2bc   : > { %v3161_v60 = vadd.f32 %v5444_v43, %v3085_v59  ;;  %v2602_v62 = vpop.f32.mrb[48].mxu1 }
 0x2bd   : > { %v3902_v61 = vpack.c.bf16 %v3160_v23, %v3159_v58  ;;  %v3162_v24 = vadd.f32 %v5446_v46, %v3086_v12  ;;  %v2988_v63 = vpop.f32.mrb[48].mxu0  ;;  %v2604_v1 = vpop.f32.mrb[49].mxu1 }
 0x2be   : > { %v3994_v0 = vadd.f32 %v2988_v63, %v2602_v62  ;;  %v2990_v2 = vpop.f32.mrb[49].mxu0  ;;  %v2606_v4 = vpop.f32.mrb[50].mxu1 }
 0x2bf   : > { %3393 = vst [vmem:[%s5457_s25 + $0xb0] sm:$0xff] %v3902_v61  ;;  %v3903_v3 = vpack.c.bf16 %v3162_v24, %v3161_v60  ;;  %v3995_v13 = vadd.f32 %v2990_v2, %v2604_v1  ;;  %v2992_v25 = vpop.f32.mrb[50].mxu0  ;;  %v2608_v29 = vpop.f32.mrb[51].mxu1 }
 0x2c0   : > { %v3087_v14 = vmul.f32 %v3994_v0, %v5440_v39  ;;  %v3996_v26 = vadd.f32 %v2992_v25, %v2606_v4  ;;  %v2994_v5 = vpop.f32.mrb[51].mxu0 }
 0x2c1   : > { %3394 = vst [vmem:[%s5457_s25 + $0xb8] sm:$0xff] %v3903_v3  ;;  %v3088_v27 = vmul.f32 %v3995_v13, %v5442_v41  ;;  %v3997_v15 = vadd.f32 %v2994_v5, %v2608_v29 }
 0x2c2   : > { %v3163_v30 = vadd.f32 %v5444_v43, %v3087_v14  ;;  %v3089_v35 = vmul.f32 %v3996_v26, %v5440_v39 }
 0x2c3   : > { %v3164_v28 = vadd.f32 %v5446_v46, %v3088_v27  ;;  %v3090_v36 = vmul.f32 %v3997_v15, %v5442_v41 }
 0x2c4   : > { %v3165_v16 = vadd.f32 %v5444_v43, %v3089_v35  ;;  %v2612_v38 = vpop.f32.mrb[52].mxu1 }
 0x2c5   : > { %v3904_v6 = vpack.c.bf16 %v3164_v28, %v3163_v30  ;;  %v3166_v37 = vadd.f32 %v5446_v46, %v3090_v36  ;;  %v2998_v7 = vpop.f32.mrb[52].mxu0  ;;  %v2614_v42 = vpop.f32.mrb[53].mxu1 }
 0x2c6   : > { %v3998_v40 = vadd.f32 %v2998_v7, %v2612_v38  ;;  %v3000_v31 = vpop.f32.mrb[53].mxu0  ;;  %v2616_v8 = vpop.f32.mrb[54].mxu1 }
 0x2c7   : > { %3395 = vst [vmem:[%s5457_s25 + $0xc0] sm:$0xff] %v3904_v6  ;;  %v3905_v44 = vpack.c.bf16 %v3166_v37, %v3165_v16  ;;  %v3999_v32 = vadd.f32 %v3000_v31, %v2614_v42  ;;  %v3002_v17 = vpop.f32.mrb[54].mxu0  ;;  %v2618_v18 = vpop.f32.mrb[55].mxu1 }
 0x2c8   : > { %v3091_v33 = vmul.f32 %v3998_v40, %v5440_v39  ;;  %v4000_v45 = vadd.f32 %v3002_v17, %v2616_v8  ;;  %v3004_v47 = vpop.f32.mrb[55].mxu0 }
 0x2c9   : > { %3396 = vst [vmem:[%s5457_s25 + $0xc8] sm:$0xff] %v3905_v44  ;;  %v3092_v48 = vmul.f32 %v3999_v32, %v5442_v41  ;;  %v4001_v19 = vadd.f32 %v3004_v47, %v2618_v18 }
 0x2ca   : > { %v3167_v34 = vadd.f32 %v5444_v43, %v3091_v33  ;;  %v3093_v49 = vmul.f32 %v4000_v45, %v5440_v39 }
 0x2cb   : > { %v3168_v50 = vadd.f32 %v5446_v46, %v3092_v48  ;;  %v3094_v51 = vmul.f32 %v4001_v19, %v5442_v41 }
 0x2cc   : > { %v3169_v20 = vadd.f32 %v5444_v43, %v3093_v49  ;;  %v2622_v9 = vpop.f32.mrb[56].mxu1 }
 0x2cd   : > { %v3906_v52 = vpack.c.bf16 %v3168_v50, %v3167_v34  ;;  %v3170_v53 = vadd.f32 %v5446_v46, %v3094_v51  ;;  %v3008_v54 = vpop.f32.mrb[56].mxu0  ;;  %v2624_v55 = vpop.f32.mrb[57].mxu1 }
 0x2ce   : > { %v4002_v10 = vadd.f32 %v3008_v54, %v2622_v9  ;;  %v3010_v56 = vpop.f32.mrb[57].mxu0  ;;  %v2626_v57 = vpop.f32.mrb[58].mxu1 }
 0x2cf   : > { %3397 = vst [vmem:[%s5457_s25 + $0xd0] sm:$0xff] %v3906_v52  ;;  %v3907_v11 = vpack.c.bf16 %v3170_v53, %v3169_v20  ;;  %v4003_v21 = vadd.f32 %v3010_v56, %v2624_v55  ;;  %v3012_v22 = vpop.f32.mrb[58].mxu0  ;;  %v2628_v23 = vpop.f32.mrb[59].mxu1 }
 0x2d0   : > { %v3095_v58 = vmul.f32 %v4002_v10, %v5440_v39  ;;  %v4004_v59 = vadd.f32 %v3012_v22, %v2626_v57  ;;  %v3014_v12 = vpop.f32.mrb[59].mxu0 }
 0x2d1   : > { %3398 = vst [vmem:[%s5457_s25 + $0xd8] sm:$0xff] %v3907_v11  ;;  %v3096_v60 = vmul.f32 %v4003_v21, %v5442_v41  ;;  %v4005_v61 = vadd.f32 %v3014_v12, %v2628_v23 }
 0x2d2   : > { %v3171_v24 = vadd.f32 %v5444_v43, %v3095_v58  ;;  %v3097_v62 = vmul.f32 %v4004_v59, %v5440_v39 }
 0x2d3   : > { %v3172_v63 = vadd.f32 %v5446_v46, %v3096_v60  ;;  %v3098_v0 = vmul.f32 %v4005_v61, %v5442_v41 }
 0x2d4   : > { %v3173_v1 = vadd.f32 %v5444_v43, %v3097_v62  ;;  %v2632_v13 = vpop.f32.mrb[60].mxu1 }
 0x2d5   : > { %v3908_v2 = vpack.c.bf16 %v3172_v63, %v3171_v24  ;;  %v3174_v3 = vadd.f32 %v5446_v46, %v3098_v0  ;;  %v3018_v4 = vpop.f32.mrb[60].mxu0  ;;  %v2634_v14 = vpop.f32.mrb[61].mxu1 }
 0x2d6   : > { %v4006_v25 = vadd.f32 %v3018_v4, %v2632_v13  ;;  %v3020_v26 = vpop.f32.mrb[61].mxu0  ;;  %v2636_v27 = vpop.f32.mrb[62].mxu1 }
 0x2d7   : > { %3399 = vst [vmem:[%s5457_s25 + $0xe0] sm:$0xff] %v3908_v2  ;;  %v3909_v29 = vpack.c.bf16 %v3174_v3, %v3173_v1  ;;  %v4007_v5 = vadd.f32 %v3020_v26, %v2634_v14  ;;  %v3022_v15 = vpop.f32.mrb[62].mxu0  ;;  %v2638_v28 = vpop.f32.mrb[63].mxu1 }
 0x2d8   : > { %v3099_v30 = vmul.f32 %v4006_v25, %v5440_v39  ;;  %v4008_v35 = vadd.f32 %v3022_v15, %v2636_v27  ;;  %v3024_v36 = vpop.f32.mrb[63].mxu0 }
 0x2d9   : > { %3400 = vst [vmem:[%s5457_s25 + $0xe8] sm:$0xff] %v3909_v29  ;;  %v3100_v16 = vmul.f32 %v4007_v5, %v5442_v41  ;;  %v4009_v6 = vadd.f32 %v3024_v36, %v2638_v28 }
 0x2da   : > { %v3175_v37 = vadd.f32 %v5444_v43, %v3099_v30  ;;  %v3101_v38 = vmul.f32 %v4008_v35, %v5440_v39 }
 0x2db   : > { %v3176_v7 = vadd.f32 %v5446_v46, %v3100_v16  ;;  %v3102_v40 = vmul.f32 %v4009_v6, %v5442_v41 }
 0x2dc   : > { %v3177_v42 = vadd.f32 %v5444_v43, %v3101_v38 }
 0x2dd   : > { %v3910_v31 = vpack.c.bf16 %v3176_v7, %v3175_v37  ;;  %v3178_v44 = vadd.f32 %v5446_v46, %v3102_v40 }
 0x2df   : > { %3401 = vst [vmem:[%s5457_s25 + $0xf0] sm:$0xff] %v3910_v31  ;;  %v3911_v39 = vpack.c.bf16 %v3178_v44, %v3177_v42 }
 0x2e1   : > { %3402 = vst [vmem:[%s5457_s25 + $0xf8] sm:$0xff] %v3911_v39 }
 0x2e2   : > { %4888 = shalt.err (!%p4885_p13)
}
 0x2e3   : > { %s4889_s6 = scalar_lea.hbm %s5640_s22, 4096  ;;  %s4893_s7 = scalar_lea.hbm %s5696_s4, 90112 }
 0x2e4   : > { %p4890_p4 = scmp.ne.s32.totalorder %s5640_s22, %s4889_s6  ;;  %p4894_p11 = scmp.lt.u32.totalorder %s5640_s22, %s5696_s4 }
 0x2e5   : > { %p4895_p1 = scmp.lt.u32.totalorder %s4893_s7, %s4889_s6  ;;  %p4897_p12 = scmp.lt.u32.totalorder %s4889_s6, %s5640_s22 }
 0x2e6   : > { %p4891_p2 = pnand %p4890_p4, %p5154_p0 }
 0x2e7   : > { %p4896_p10 = por %p4895_p1, %p4894_p11 }
 0x2e8   : > { %p4892_p8 = pneg %p4891_p2 }
 0x2e9   : > { %p4898_p6 = por %p4897_p12, %p4896_p10 }
 0x2eb   : > { %p4899_p3 = pnand %p4898_p6, %p4892_p8 }
 0x2ed   : > { %4902 = shalt.err (!%p4899_p3)
}
 0x2ee   : > { %s4977_s25 = smov 128   ;;  %s4978_s27 = smov 8  }
 0x2ef   : > { %4219 = dma.vmem_to_hbm [thread:$0]  (%p5154_p0), %s5642_s9, 4096, %s5640_s22, %s3404_s18, %s4977_s25, %s4977_s25, %s4978_s27  }
 0x2f0 PF: > { %s5716_s12 = sld [smem:[#allocation15_spill]]  ;;  %p4246_p5 = scmp.ge.s32.totalorder %s4965_s20, 2 }
 0x2f1   : > { %s3435_s21 = sand.u32 1, %s4945_s15  }
 0x2f2   : > { %s3436_s26 = scalar_lea.sflag [#allocation4], %s3435_s21 }
 0x2f6   : > { %p5717_p7 = scmp.ne.s32.totalorder %s5716_s12, 0 }
 0x2f8   : > { %p4236_p9 = pnand %p4246_p5, %p5717_p7 }
 0x2fa   : > { %4940 = dma.done.wait (!%p4236_p9), %s3436_s26, 4096  }
 0x2fb   : > { %4942 = vsyncadd (!%p4236_p9), %s3436_s26, 4294963200  ;;  %s22_s20 = sadd.s32 1, %s4965_s20   ;;  %s5718_s15 = smov %s4949_s16 }
 0x2fc   : > { %p19_p13 = scmp.ge.s32.totalorder %s22_s20, 24   ;;  %s5719_s16 = smov %s4953_s17 }
 0x2fd   : > { %s5720_s17 = smov %s5170_s24  ;;  %s5721_s18 = smov %s4961_s19 }
 0x2fe   : > { %s5722_s19 = smov %s5724_s29  ;;  %21 = sbr.rel (!%p19_p13) target bundleno = 8 (0x8), region = 96 }
 0x305   :  { %3441 = vsyncpa [#allocation3], 1 }
 0x306   :  { %3443 = vsyncpa [#allocation3 + $0x1], 1 }
 0x307   :  { %3444 = vsyncpa [#allocation6], 1 }
 0x308   :  { %3445 = vsyncpa [#allocation9], 1 }
 0x309   :  { %3446 = vsyncpa [#allocation4], 1 }
 0x30a   :  { %3448 = vsyncpa [#allocation4 + $0x1], 1 }

</bundles_post_ra>
